<compile_context>
chip_gen: v5e
topology: v5e:2x2
jax: 0.10.0
libtpu: 0.0.40
codegen_flags: <defaults>
</compile_context>

<pallas_src>
import jax
import jax.numpy as jnp
from jax.experimental import pallas as pl
from jax.experimental.pallas import tpu as pltpu

INPUT_SIZE = 8
WINDOW_SIZE = 6
HIDDEN_SIZE = 32
NUM_LAYERS = 2
BATCH = 2
SEQ_LEN = 10  # total length -> 4 autoregressive steps, output (B, 5, 1)


# ---------------------------------------------------------------------------
# Fused kernel: encoder layers + AR decode, no grid, everything in VMEM/vregs.
# ---------------------------------------------------------------------------
def _fused_lstm_ar_kernel(x_ref, w0_ref, b0_ref, w1_ref, b1_ref,
                          wc_ref, bc_ref, wlin_ref, blin_ref, out_ref):
    H = HIDDEN_SIZE
    B, T, D = x_ref.shape
    W = WINDOW_SIZE
    n_post = T - W

    x_all = x_ref[...]                                   # (B, T, D), tiny
    wlin = wlin_ref[...]                                 # (1, H)
    blin = blin_ref[...]                                 # (1, 1)

    # Hoisted lane masks (JAX does not CSE broadcast_in_dim -> build once).
    gate_lane = jax.lax.broadcasted_iota(jnp.int32, (B, 4 * H), 1)
    is_g_lane = jnp.logical_and(gate_lane >= 2 * H, gate_lane < 3 * H)
    feat_lane = jax.lax.broadcasted_iota(jnp.int32, (B, D), 1)

    def cell(z, h, c, w_ref, b_ref):
        # Single fused gate matmul: [z, h] @ [[Wih]; [Whh]] + (b_ih + b_hh).
        zin = jnp.concatenate([z, h], axis=1)            # (B, Din + H)
        gates = (jnp.dot(zin, w_ref[...],
                         preferred_element_type=jnp.float32)
                 + b_ref[...])                           # (B, 4H) = full lanes
        # Nonlinearities on the full 128-lane vreg; gate order i, f, g, o.
        act = jnp.where(is_g_lane, jnp.tanh(gates), jax.nn.sigmoid(gates))
        i_g = act[:, 0:H]
        f_g = act[:, H:2 * H]
        g_g = act[:, 2 * H:3 * H]
        o_g = act[:, 3 * H:4 * H]
        c_new = f_g * c + i_g * g_g
        h_new = o_g * jnp.tanh(c_new)
        return h_new, c_new

    def linear(h):
        # (H -> 1) head as VPU multiply + lane reduce (no 1-column matmul).
        return jnp.sum(h * wlin, axis=1, keepdims=True) + blin   # (B, 1)

    zero = jnp.zeros((B, H), jnp.float32)

    # ---- Encoder layer 0 over the window; hidden sequence stays on-chip. ---
    h, c = zero, zero
    hseq = []
    for t in range(W):
        h, c = cell(x_all[:, t, :], h, c, w0_ref, b0_ref)
        hseq.append(h)

    # ---- Encoder layer 1 (only the final h/c are consumed downstream). -----
    h, c = zero, zero
    for t in range(W):
        h, c = cell(hseq[t], h, c, w1_ref, b1_ref)

    # ---- Autoregressive LSTMCell + linear head. -----------------------------
    pred = linear(h)
    preds = [pred]
    for i in range(n_post):
        x_t = x_all[:, W + i, :]                         # (B, D)
        # feature = concat([pred, x_t[:, 1:]]) == replace lane 0 with pred.
        feat = jnp.where(feat_lane == 0, pred, x_t)
        h, c = cell(feat, h, c, wc_ref, bc_ref)
        pred = linear(h)
        preds.append(pred)

    # Single store of all predictions at the end of the kernel.
    out_ref[...] = jnp.concatenate(preds, axis=1)        # (B, n_post + 1)


@jax.jit
def pallas_forward(x, params):
    B, T, D = x.shape
    n_out = T - WINDOW_SIZE + 1
    vmem = lambda: pl.BlockSpec(memory_space=pltpu.MemorySpace.VMEM)
    out = pl.pallas_call(
        _fused_lstm_ar_kernel,
        out_shape=jax.ShapeDtypeStruct((B, n_out), jnp.float32),
        in_specs=[vmem() for _ in range(9)],
        out_specs=vmem(),
    )(x, params["w0"], params["b0"], params["w1"], params["b1"],
      params["wc"], params["bc"], params["wlin"], params["blin"])
    return out[:, :, None]                               # (B, n_out, 1)


# ---------------------------------------------------------------------------
# Parameters (deterministic, torch-style U(-1/sqrt(H), 1/sqrt(H)) init).
# Gate weights are pre-concatenated once: W = [Wih; Whh] of shape (Din+H, 4H).
# ---------------------------------------------------------------------------
def init_params(key):
    H, D = HIDDEN_SIZE, INPUT_SIZE
    k = 1.0 / (H ** 0.5)

    def u(kk, shape):
        return jax.random.uniform(kk, shape, jnp.float32, -k, k)

    keys = iter(jax.random.split(key, 4 * NUM_LAYERS + 6))
    ws, bs = [], []
    for layer in range(NUM_LAYERS):
        din = D if layer == 0 else H
        wih = u(next(keys), (din, 4 * H))
        whh = u(next(keys), (H, 4 * H))
        b = (u(next(keys), (4 * H,))
             + u(next(keys), (4 * H,))).reshape(1, 4 * H)
        ws.append(jnp.concatenate([wih, whh], axis=0))   # (din + H, 4H)
        bs.append(b)
    wih_c = u(next(keys), (D, 4 * H))
    whh_c = u(next(keys), (H, 4 * H))
    bc = (u(next(keys), (4 * H,))
          + u(next(keys), (4 * H,))).reshape(1, 4 * H)
    return dict(
        w0=ws[0], b0=bs[0], w1=ws[1], b1=bs[1],
        wc=jnp.concatenate([wih_c, whh_c], axis=0),      # (D + H, 4H)
        bc=bc,
        wlin=u(next(keys), (1, H)),
        blin=u(next(keys), (1, 1)),
    )


# ---------------------------------------------------------------------------
# Pure-JAX reference (no Pallas) with identical math.
# ---------------------------------------------------------------------------
def reference_forward(x, params):
    B, T, D = x.shape
    H = HIDDEN_SIZE

    def cell(z, h, c, w, b):
        gates = jnp.concatenate([z, h], axis=1) @ w + b
        i = jax.nn.sigmoid(gates[:, 0:H])
        f = jax.nn.sigmoid(gates[:, H:2 * H])
        g = jnp.tanh(gates[:, 2 * H:3 * H])
        o = jax.nn.sigmoid(gates[:, 3 * H:4 * H])
        c = f * c + i * g
        return o * jnp.tanh(c), c

    def linear(h):
        return h @ params["wlin"].T + params["blin"]

    x_pre = x[:, :WINDOW_SIZE]
    x_post = x[:, WINDOW_SIZE:]

    seq = x_pre
    h = c = None
    for w, b in [(params["w0"], params["b0"]), (params["w1"], params["b1"])]:
        h = jnp.zeros((B, H), jnp.float32)
        c = jnp.zeros((B, H), jnp.float32)
        outs = []
        for t in range(seq.shape[1]):
            h, c = cell(seq[:, t], h, c, w, b)
            outs.append(h)
        seq = jnp.stack(outs, axis=1)

    pred = linear(h)
    outs = [pred]
    for i in range(x_post.shape[1]):
        feat = jnp.concatenate([pred, x_post[:, i, 1:]], axis=1)
        h, c = cell(feat, h, c, params["wc"], params["bc"])
        pred = linear(h)
        outs.append(pred)
    return jnp.stack(outs, axis=1)                       # (B, n_out, 1)


if __name__ == "__main__":
    key = jax.random.PRNGKey(0)
    pkey, xkey = jax.random.split(key)
    params = init_params(pkey)
    x = jax.random.normal(xkey, (BATCH, SEQ_LEN, INPUT_SIZE), jnp.float32)

    out = pallas_forward(x, params)
    out = jax.block_until_ready(out)

    expected_shape = (BATCH, SEQ_LEN - WINDOW_SIZE + 1, 1)
    assert out.shape == expected_shape, (out.shape, expected_shape)

    ref = reference_forward(x, params)
    if not bool(jnp.allclose(out, ref, atol=1e-3, rtol=1e-3)):
        raise AssertionError(
            f"Pallas output mismatch vs reference; max abs err "
            f"{float(jnp.max(jnp.abs(out - ref)))}")

    print("KERNEL_OK")
</pallas_src>

<mosaic_0001>
module attributes {stable_mosaic.version = 11 : i64} {
  func.func @_fused_lstm_ar_kernel(%arg0: memref<2x10x8xf32, #tpu.memory_space<vmem>>, %arg1: memref<40x128xf32, #tpu.memory_space<vmem>>, %arg2: memref<1x128xf32, #tpu.memory_space<vmem>>, %arg3: memref<64x128xf32, #tpu.memory_space<vmem>>, %arg4: memref<1x128xf32, #tpu.memory_space<vmem>>, %arg5: memref<40x128xf32, #tpu.memory_space<vmem>>, %arg6: memref<1x128xf32, #tpu.memory_space<vmem>>, %arg7: memref<1x32xf32, #tpu.memory_space<vmem>>, %arg8: memref<1x1xf32, #tpu.memory_space<vmem>>, %arg9: memref<2x5xf32, #tpu.memory_space<vmem>>) attributes {dimension_semantics = [], scalar_prefetch = 0 : i64, scratch_operands = 0 : i64, tpu.core_type = #tpu.core_type<tc>} {
    %c0 = arith.constant 0 : index
    %c0_0 = arith.constant 0 : index
    %c0_1 = arith.constant 0 : index
    %0 = vector.load %arg0[%c0, %c0_0, %c0_1] : memref<2x10x8xf32, #tpu.memory_space<vmem>>, vector<2x10x8xf32>
    %c0_2 = arith.constant 0 : index
    %c0_3 = arith.constant 0 : index
    %1 = vector.load %arg7[%c0_2, %c0_3] : memref<1x32xf32, #tpu.memory_space<vmem>>, vector<1x32xf32>
    %c0_4 = arith.constant 0 : index
    %c0_5 = arith.constant 0 : index
    %2 = vector.load %arg8[%c0_4, %c0_5] : memref<1x1xf32, #tpu.memory_space<vmem>>, vector<1x1xf32>
    %3 = tpu.iota {dimensions = array<i32: 1>} : vector<2x128xi32>
    %c64_i32 = arith.constant 64 : i32
    %4 = vector.broadcast %c64_i32 : i32 to vector<2x128xi32>
    %5 = arith.cmpi sge, %3, %4 : vector<2x128xi32>
    %c96_i32 = arith.constant 96 : i32
    %6 = vector.broadcast %c96_i32 : i32 to vector<2x128xi32>
    %7 = arith.cmpi slt, %3, %6 : vector<2x128xi32>
    %8 = arith.andi %5, %7 : vector<2x128xi1>
    %9 = tpu.iota {dimensions = array<i32: 1>} : vector<2x8xi32>
    %cst = arith.constant 0.000000e+00 : f32
    %10 = vector.broadcast %cst : f32 to vector<2x32xf32>
    %11 = vector.extract_strided_slice %0 {offsets = [0, 0, 0], sizes = [2, 1, 8], strides = [1, 1, 1]} : vector<2x10x8xf32> to vector<2x1x8xf32>
    %12 = vector.shape_cast %11 : vector<2x1x8xf32> to vector<2x8xf32>
    %13 = tpu.concatenate %12, %10 in 1 : vector<2x8xf32>, vector<2x32xf32> -> vector<2x40xf32>
    %c0_6 = arith.constant 0 : index
    %c0_7 = arith.constant 0 : index
    %14 = vector.load %arg1[%c0_6, %c0_7] : memref<40x128xf32, #tpu.memory_space<vmem>>, vector<40x128xf32>
    %cst_8 = arith.constant dense<0.000000e+00> : vector<2x128xf32>
    %15 = tpu.matmul %13, %14, %cst_8 {dimension_numbers = #tpu.dot_dimension_numbers<[1], [0], [0], [1], [0, 0, 1, 1], [], []>} : vector<2x40xf32>, vector<40x128xf32>, vector<2x128xf32> -> vector<2x128xf32>
    %c0_9 = arith.constant 0 : index
    %c0_10 = arith.constant 0 : index
    %16 = vector.load %arg2[%c0_9, %c0_10] : memref<1x128xf32, #tpu.memory_space<vmem>>, vector<1x128xf32>
    %17 = vector.broadcast %16 : vector<1x128xf32> to vector<2x128xf32>
    %18 = arith.addf %15, %17 : vector<2x128xf32>
    %19 = math.tanh %18 : vector<2x128xf32>
    %20 = arith.negf %18 : vector<2x128xf32>
    %21 = math.exp %20 : vector<2x128xf32>
    %cst_11 = arith.constant 1.000000e+00 : f32
    %22 = vector.broadcast %cst_11 : f32 to vector<2x128xf32>
    %23 = arith.addf %22, %21 : vector<2x128xf32>
    %24 = arith.divf %22, %23 : vector<2x128xf32>
    %25 = arith.select %8, %19, %24 : vector<2x128xi1>, vector<2x128xf32>
    %26 = vector.extract_strided_slice %25 {offsets = [0, 0], sizes = [2, 32], strides = [1, 1]} : vector<2x128xf32> to vector<2x32xf32>
    %27 = vector.extract_strided_slice %25 {offsets = [0, 32], sizes = [2, 32], strides = [1, 1]} : vector<2x128xf32> to vector<2x32xf32>
    %28 = vector.extract_strided_slice %25 {offsets = [0, 64], sizes = [2, 32], strides = [1, 1]} : vector<2x128xf32> to vector<2x32xf32>
    %29 = vector.extract_strided_slice %25 {offsets = [0, 96], sizes = [2, 32], strides = [1, 1]} : vector<2x128xf32> to vector<2x32xf32>
    %30 = arith.mulf %27, %10 : vector<2x32xf32>
    %31 = arith.mulf %26, %28 : vector<2x32xf32>
    %32 = arith.addf %30, %31 : vector<2x32xf32>
    %33 = math.tanh %32 : vector<2x32xf32>
    %34 = arith.mulf %29, %33 : vector<2x32xf32>
    %35 = vector.extract_strided_slice %0 {offsets = [0, 1, 0], sizes = [2, 1, 8], strides = [1, 1, 1]} : vector<2x10x8xf32> to vector<2x1x8xf32>
    %36 = vector.shape_cast %35 : vector<2x1x8xf32> to vector<2x8xf32>
    %37 = tpu.concatenate %36, %34 in 1 : vector<2x8xf32>, vector<2x32xf32> -> vector<2x40xf32>
    %c0_12 = arith.constant 0 : index
    %c0_13 = arith.constant 0 : index
    %38 = vector.load %arg1[%c0_12, %c0_13] : memref<40x128xf32, #tpu.memory_space<vmem>>, vector<40x128xf32>
    %cst_14 = arith.constant dense<0.000000e+00> : vector<2x128xf32>
    %39 = tpu.matmul %37, %38, %cst_14 {dimension_numbers = #tpu.dot_dimension_numbers<[1], [0], [0], [1], [0, 0, 1, 1], [], []>} : vector<2x40xf32>, vector<40x128xf32>, vector<2x128xf32> -> vector<2x128xf32>
    %c0_15 = arith.constant 0 : index
    %c0_16 = arith.constant 0 : index
    %40 = vector.load %arg2[%c0_15, %c0_16] : memref<1x128xf32, #tpu.memory_space<vmem>>, vector<1x128xf32>
    %41 = vector.broadcast %40 : vector<1x128xf32> to vector<2x128xf32>
    %42 = arith.addf %39, %41 : vector<2x128xf32>
    %43 = math.tanh %42 : vector<2x128xf32>
    %44 = arith.negf %42 : vector<2x128xf32>
    %45 = math.exp %44 : vector<2x128xf32>
    %cst_17 = arith.constant 1.000000e+00 : f32
    %46 = vector.broadcast %cst_17 : f32 to vector<2x128xf32>
    %47 = arith.addf %46, %45 : vector<2x128xf32>
    %48 = arith.divf %46, %47 : vector<2x128xf32>
    %49 = arith.select %8, %43, %48 : vector<2x128xi1>, vector<2x128xf32>
    %50 = vector.extract_strided_slice %49 {offsets = [0, 0], sizes = [2, 32], strides = [1, 1]} : vector<2x128xf32> to vector<2x32xf32>
    %51 = vector.extract_strided_slice %49 {offsets = [0, 32], sizes = [2, 32], strides = [1, 1]} : vector<2x128xf32> to vector<2x32xf32>
    %52 = vector.extract_strided_slice %49 {offsets = [0, 64], sizes = [2, 32], strides = [1, 1]} : vector<2x128xf32> to vector<2x32xf32>
    %53 = vector.extract_strided_slice %49 {offsets = [0, 96], sizes = [2, 32], strides = [1, 1]} : vector<2x128xf32> to vector<2x32xf32>
    %54 = arith.mulf %51, %32 : vector<2x32xf32>
    %55 = arith.mulf %50, %52 : vector<2x32xf32>
    %56 = arith.addf %54, %55 : vector<2x32xf32>
    %57 = math.tanh %56 : vector<2x32xf32>
    %58 = arith.mulf %53, %57 : vector<2x32xf32>
    %59 = vector.extract_strided_slice %0 {offsets = [0, 2, 0], sizes = [2, 1, 8], strides = [1, 1, 1]} : vector<2x10x8xf32> to vector<2x1x8xf32>
    %60 = vector.shape_cast %59 : vector<2x1x8xf32> to vector<2x8xf32>
    %61 = tpu.concatenate %60, %58 in 1 : vector<2x8xf32>, vector<2x32xf32> -> vector<2x40xf32>
    %c0_18 = arith.constant 0 : index
    %c0_19 = arith.constant 0 : index
    %62 = vector.load %arg1[%c0_18, %c0_19] : memref<40x128xf32, #tpu.memory_space<vmem>>, vector<40x128xf32>
    %cst_20 = arith.constant dense<0.000000e+00> : vector<2x128xf32>
    %63 = tpu.matmul %61, %62, %cst_20 {dimension_numbers = #tpu.dot_dimension_numbers<[1], [0], [0], [1], [0, 0, 1, 1], [], []>} : vector<2x40xf32>, vector<40x128xf32>, vector<2x128xf32> -> vector<2x128xf32>
    %c0_21 = arith.constant 0 : index
    %c0_22 = arith.constant 0 : index
    %64 = vector.load %arg2[%c0_21, %c0_22] : memref<1x128xf32, #tpu.memory_space<vmem>>, vector<1x128xf32>
    %65 = vector.broadcast %64 : vector<1x128xf32> to vector<2x128xf32>
    %66 = arith.addf %63, %65 : vector<2x128xf32>
    %67 = math.tanh %66 : vector<2x128xf32>
    %68 = arith.negf %66 : vector<2x128xf32>
    %69 = math.exp %68 : vector<2x128xf32>
    %cst_23 = arith.constant 1.000000e+00 : f32
    %70 = vector.broadcast %cst_23 : f32 to vector<2x128xf32>
    %71 = arith.addf %70, %69 : vector<2x128xf32>
    %72 = arith.divf %70, %71 : vector<2x128xf32>
    %73 = arith.select %8, %67, %72 : vector<2x128xi1>, vector<2x128xf32>
    %74 = vector.extract_strided_slice %73 {offsets = [0, 0], sizes = [2, 32], strides = [1, 1]} : vector<2x128xf32> to vector<2x32xf32>
    %75 = vector.extract_strided_slice %73 {offsets = [0, 32], sizes = [2, 32], strides = [1, 1]} : vector<2x128xf32> to vector<2x32xf32>
    %76 = vector.extract_strided_slice %73 {offsets = [0, 64], sizes = [2, 32], strides = [1, 1]} : vector<2x128xf32> to vector<2x32xf32>
    %77 = vector.extract_strided_slice %73 {offsets = [0, 96], sizes = [2, 32], strides = [1, 1]} : vector<2x128xf32> to vector<2x32xf32>
    %78 = arith.mulf %75, %56 : vector<2x32xf32>
    %79 = arith.mulf %74, %76 : vector<2x32xf32>
    %80 = arith.addf %78, %79 : vector<2x32xf32>
    %81 = math.tanh %80 : vector<2x32xf32>
    %82 = arith.mulf %77, %81 : vector<2x32xf32>
    %83 = vector.extract_strided_slice %0 {offsets = [0, 3, 0], sizes = [2, 1, 8], strides = [1, 1, 1]} : vector<2x10x8xf32> to vector<2x1x8xf32>
    %84 = vector.shape_cast %83 : vector<2x1x8xf32> to vector<2x8xf32>
    %85 = tpu.concatenate %84, %82 in 1 : vector<2x8xf32>, vector<2x32xf32> -> vector<2x40xf32>
    %c0_24 = arith.constant 0 : index
    %c0_25 = arith.constant 0 : index
    %86 = vector.load %arg1[%c0_24, %c0_25] : memref<40x128xf32, #tpu.memory_space<vmem>>, vector<40x128xf32>
    %cst_26 = arith.constant dense<0.000000e+00> : vector<2x128xf32>
    %87 = tpu.matmul %85, %86, %cst_26 {dimension_numbers = #tpu.dot_dimension_numbers<[1], [0], [0], [1], [0, 0, 1, 1], [], []>} : vector<2x40xf32>, vector<40x128xf32>, vector<2x128xf32> -> vector<2x128xf32>
    %c0_27 = arith.constant 0 : index
    %c0_28 = arith.constant 0 : index
    %88 = vector.load %arg2[%c0_27, %c0_28] : memref<1x128xf32, #tpu.memory_space<vmem>>, vector<1x128xf32>
    %89 = vector.broadcast %88 : vector<1x128xf32> to vector<2x128xf32>
    %90 = arith.addf %87, %89 : vector<2x128xf32>
    %91 = math.tanh %90 : vector<2x128xf32>
    %92 = arith.negf %90 : vector<2x128xf32>
    %93 = math.exp %92 : vector<2x128xf32>
    %cst_29 = arith.constant 1.000000e+00 : f32
    %94 = vector.broadcast %cst_29 : f32 to vector<2x128xf32>
    %95 = arith.addf %94, %93 : vector<2x128xf32>
    %96 = arith.divf %94, %95 : vector<2x128xf32>
    %97 = arith.select %8, %91, %96 : vector<2x128xi1>, vector<2x128xf32>
    %98 = vector.extract_strided_slice %97 {offsets = [0, 0], sizes = [2, 32], strides = [1, 1]} : vector<2x128xf32> to vector<2x32xf32>
    %99 = vector.extract_strided_slice %97 {offsets = [0, 32], sizes = [2, 32], strides = [1, 1]} : vector<2x128xf32> to vector<2x32xf32>
    %100 = vector.extract_strided_slice %97 {offsets = [0, 64], sizes = [2, 32], strides = [1, 1]} : vector<2x128xf32> to vector<2x32xf32>
    %101 = vector.extract_strided_slice %97 {offsets = [0, 96], sizes = [2, 32], strides = [1, 1]} : vector<2x128xf32> to vector<2x32xf32>
    %102 = arith.mulf %99, %80 : vector<2x32xf32>
    %103 = arith.mulf %98, %100 : vector<2x32xf32>
    %104 = arith.addf %102, %103 : vector<2x32xf32>
    %105 = math.tanh %104 : vector<2x32xf32>
    %106 = arith.mulf %101, %105 : vector<2x32xf32>
    %107 = vector.extract_strided_slice %0 {offsets = [0, 4, 0], sizes = [2, 1, 8], strides = [1, 1, 1]} : vector<2x10x8xf32> to vector<2x1x8xf32>
    %108 = vector.shape_cast %107 : vector<2x1x8xf32> to vector<2x8xf32>
    %109 = tpu.concatenate %108, %106 in 1 : vector<2x8xf32>, vector<2x32xf32> -> vector<2x40xf32>
    %c0_30 = arith.constant 0 : index
    %c0_31 = arith.constant 0 : index
    %110 = vector.load %arg1[%c0_30, %c0_31] : memref<40x128xf32, #tpu.memory_space<vmem>>, vector<40x128xf32>
    %cst_32 = arith.constant dense<0.000000e+00> : vector<2x128xf32>
    %111 = tpu.matmul %109, %110, %cst_32 {dimension_numbers = #tpu.dot_dimension_numbers<[1], [0], [0], [1], [0, 0, 1, 1], [], []>} : vector<2x40xf32>, vector<40x128xf32>, vector<2x128xf32> -> vector<2x128xf32>
    %c0_33 = arith.constant 0 : index
    %c0_34 = arith.constant 0 : index
    %112 = vector.load %arg2[%c0_33, %c0_34] : memref<1x128xf32, #tpu.memory_space<vmem>>, vector<1x128xf32>
    %113 = vector.broadcast %112 : vector<1x128xf32> to vector<2x128xf32>
    %114 = arith.addf %111, %113 : vector<2x128xf32>
    %115 = math.tanh %114 : vector<2x128xf32>
    %116 = arith.negf %114 : vector<2x128xf32>
    %117 = math.exp %116 : vector<2x128xf32>
    %cst_35 = arith.constant 1.000000e+00 : f32
    %118 = vector.broadcast %cst_35 : f32 to vector<2x128xf32>
    %119 = arith.addf %118, %117 : vector<2x128xf32>
    %120 = arith.divf %118, %119 : vector<2x128xf32>
    %121 = arith.select %8, %115, %120 : vector<2x128xi1>, vector<2x128xf32>
    %122 = vector.extract_strided_slice %121 {offsets = [0, 0], sizes = [2, 32], strides = [1, 1]} : vector<2x128xf32> to vector<2x32xf32>
    %123 = vector.extract_strided_slice %121 {offsets = [0, 32], sizes = [2, 32], strides = [1, 1]} : vector<2x128xf32> to vector<2x32xf32>
    %124 = vector.extract_strided_slice %121 {offsets = [0, 64], sizes = [2, 32], strides = [1, 1]} : vector<2x128xf32> to vector<2x32xf32>
    %125 = vector.extract_strided_slice %121 {offsets = [0, 96], sizes = [2, 32], strides = [1, 1]} : vector<2x128xf32> to vector<2x32xf32>
    %126 = arith.mulf %123, %104 : vector<2x32xf32>
    %127 = arith.mulf %122, %124 : vector<2x32xf32>
    %128 = arith.addf %126, %127 : vector<2x32xf32>
    %129 = math.tanh %128 : vector<2x32xf32>
    %130 = arith.mulf %125, %129 : vector<2x32xf32>
    %131 = vector.extract_strided_slice %0 {offsets = [0, 5, 0], sizes = [2, 1, 8], strides = [1, 1, 1]} : vector<2x10x8xf32> to vector<2x1x8xf32>
    %132 = vector.shape_cast %131 : vector<2x1x8xf32> to vector<2x8xf32>
    %133 = tpu.concatenate %132, %130 in 1 : vector<2x8xf32>, vector<2x32xf32> -> vector<2x40xf32>
    %c0_36 = arith.constant 0 : index
    %c0_37 = arith.constant 0 : index
    %134 = vector.load %arg1[%c0_36, %c0_37] : memref<40x128xf32, #tpu.memory_space<vmem>>, vector<40x128xf32>
    %cst_38 = arith.constant dense<0.000000e+00> : vector<2x128xf32>
    %135 = tpu.matmul %133, %134, %cst_38 {dimension_numbers = #tpu.dot_dimension_numbers<[1], [0], [0], [1], [0, 0, 1, 1], [], []>} : vector<2x40xf32>, vector<40x128xf32>, vector<2x128xf32> -> vector<2x128xf32>
    %c0_39 = arith.constant 0 : index
    %c0_40 = arith.constant 0 : index
    %136 = vector.load %arg2[%c0_39, %c0_40] : memref<1x128xf32, #tpu.memory_space<vmem>>, vector<1x128xf32>
    %137 = vector.broadcast %136 : vector<1x128xf32> to vector<2x128xf32>
    %138 = arith.addf %135, %137 : vector<2x128xf32>
    %139 = math.tanh %138 : vector<2x128xf32>
    %140 = arith.negf %138 : vector<2x128xf32>
    %141 = math.exp %140 : vector<2x128xf32>
    %cst_41 = arith.constant 1.000000e+00 : f32
    %142 = vector.broadcast %cst_41 : f32 to vector<2x128xf32>
    %143 = arith.addf %142, %141 : vector<2x128xf32>
    %144 = arith.divf %142, %143 : vector<2x128xf32>
    %145 = arith.select %8, %139, %144 : vector<2x128xi1>, vector<2x128xf32>
    %146 = vector.extract_strided_slice %145 {offsets = [0, 0], sizes = [2, 32], strides = [1, 1]} : vector<2x128xf32> to vector<2x32xf32>
    %147 = vector.extract_strided_slice %145 {offsets = [0, 32], sizes = [2, 32], strides = [1, 1]} : vector<2x128xf32> to vector<2x32xf32>
    %148 = vector.extract_strided_slice %145 {offsets = [0, 64], sizes = [2, 32], strides = [1, 1]} : vector<2x128xf32> to vector<2x32xf32>
    %149 = vector.extract_strided_slice %145 {offsets = [0, 96], sizes = [2, 32], strides = [1, 1]} : vector<2x128xf32> to vector<2x32xf32>
    %150 = arith.mulf %147, %128 : vector<2x32xf32>
    %151 = arith.mulf %146, %148 : vector<2x32xf32>
    %152 = arith.addf %150, %151 : vector<2x32xf32>
    %153 = math.tanh %152 : vector<2x32xf32>
    %154 = arith.mulf %149, %153 : vector<2x32xf32>
    %155 = tpu.concatenate %34, %10 in 1 : vector<2x32xf32>, vector<2x32xf32> -> vector<2x64xf32>
    %c0_42 = arith.constant 0 : index
    %c0_43 = arith.constant 0 : index
    %156 = vector.load %arg3[%c0_42, %c0_43] : memref<64x128xf32, #tpu.memory_space<vmem>>, vector<64x128xf32>
    %cst_44 = arith.constant dense<0.000000e+00> : vector<2x128xf32>
    %157 = tpu.matmul %155, %156, %cst_44 {dimension_numbers = #tpu.dot_dimension_numbers<[1], [0], [0], [1], [0, 0, 1, 1], [], []>} : vector<2x64xf32>, vector<64x128xf32>, vector<2x128xf32> -> vector<2x128xf32>
    %c0_45 = arith.constant 0 : index
    %c0_46 = arith.constant 0 : index
    %158 = vector.load %arg4[%c0_45, %c0_46] : memref<1x128xf32, #tpu.memory_space<vmem>>, vector<1x128xf32>
    %159 = vector.broadcast %158 : vector<1x128xf32> to vector<2x128xf32>
    %160 = arith.addf %157, %159 : vector<2x128xf32>
    %161 = math.tanh %160 : vector<2x128xf32>
    %162 = arith.negf %160 : vector<2x128xf32>
    %163 = math.exp %162 : vector<2x128xf32>
    %cst_47 = arith.constant 1.000000e+00 : f32
    %164 = vector.broadcast %cst_47 : f32 to vector<2x128xf32>
    %165 = arith.addf %164, %163 : vector<2x128xf32>
    %166 = arith.divf %164, %165 : vector<2x128xf32>
    %167 = arith.select %8, %161, %166 : vector<2x128xi1>, vector<2x128xf32>
    %168 = vector.extract_strided_slice %167 {offsets = [0, 0], sizes = [2, 32], strides = [1, 1]} : vector<2x128xf32> to vector<2x32xf32>
    %169 = vector.extract_strided_slice %167 {offsets = [0, 32], sizes = [2, 32], strides = [1, 1]} : vector<2x128xf32> to vector<2x32xf32>
    %170 = vector.extract_strided_slice %167 {offsets = [0, 64], sizes = [2, 32], strides = [1, 1]} : vector<2x128xf32> to vector<2x32xf32>
    %171 = vector.extract_strided_slice %167 {offsets = [0, 96], sizes = [2, 32], strides = [1, 1]} : vector<2x128xf32> to vector<2x32xf32>
    %172 = arith.mulf %169, %10 : vector<2x32xf32>
    %173 = arith.mulf %168, %170 : vector<2x32xf32>
    %174 = arith.addf %172, %173 : vector<2x32xf32>
    %175 = math.tanh %174 : vector<2x32xf32>
    %176 = arith.mulf %171, %175 : vector<2x32xf32>
    %177 = tpu.concatenate %58, %176 in 1 : vector<2x32xf32>, vector<2x32xf32> -> vector<2x64xf32>
    %c0_48 = arith.constant 0 : index
    %c0_49 = arith.constant 0 : index
    %178 = vector.load %arg3[%c0_48, %c0_49] : memref<64x128xf32, #tpu.memory_space<vmem>>, vector<64x128xf32>
    %cst_50 = arith.constant dense<0.000000e+00> : vector<2x128xf32>
    %179 = tpu.matmul %177, %178, %cst_50 {dimension_numbers = #tpu.dot_dimension_numbers<[1], [0], [0], [1], [0, 0, 1, 1], [], []>} : vector<2x64xf32>, vector<64x128xf32>, vector<2x128xf32> -> vector<2x128xf32>
    %c0_51 = arith.constant 0 : index
    %c0_52 = arith.constant 0 : index
    %180 = vector.load %arg4[%c0_51, %c0_52] : memref<1x128xf32, #tpu.memory_space<vmem>>, vector<1x128xf32>
    %181 = vector.broadcast %180 : vector<1x128xf32> to vector<2x128xf32>
    %182 = arith.addf %179, %181 : vector<2x128xf32>
    %183 = math.tanh %182 : vector<2x128xf32>
    %184 = arith.negf %182 : vector<2x128xf32>
    %185 = math.exp %184 : vector<2x128xf32>
    %cst_53 = arith.constant 1.000000e+00 : f32
    %186 = vector.broadcast %cst_53 : f32 to vector<2x128xf32>
    %187 = arith.addf %186, %185 : vector<2x128xf32>
    %188 = arith.divf %186, %187 : vector<2x128xf32>
    %189 = arith.select %8, %183, %188 : vector<2x128xi1>, vector<2x128xf32>
    %190 = vector.extract_strided_slice %189 {offsets = [0, 0], sizes = [2, 32], strides = [1, 1]} : vector<2x128xf32> to vector<2x32xf32>
    %191 = vector.extract_strided_slice %189 {offsets = [0, 32], sizes = [2, 32], strides = [1, 1]} : vector<2x128xf32> to vector<2x32xf32>
    %192 = vector.extract_strided_slice %189 {offsets = [0, 64], sizes = [2, 32], strides = [1, 1]} : vector<2x128xf32> to vector<2x32xf32>
    %193 = vector.extract_strided_slice %189 {offsets = [0, 96], sizes = [2, 32], strides = [1, 1]} : vector<2x128xf32> to vector<2x32xf32>
    %194 = arith.mulf %191, %174 : vector<2x32xf32>
    %195 = arith.mulf %190, %192 : vector<2x32xf32>
    %196 = arith.addf %194, %195 : vector<2x32xf32>
    %197 = math.tanh %196 : vector<2x32xf32>
    %198 = arith.mulf %193, %197 : vector<2x32xf32>
    %199 = tpu.concatenate %82, %198 in 1 : vector<2x32xf32>, vector<2x32xf32> -> vector<2x64xf32>
    %c0_54 = arith.constant 0 : index
    %c0_55 = arith.constant 0 : index
    %200 = vector.load %arg3[%c0_54, %c0_55] : memref<64x128xf32, #tpu.memory_space<vmem>>, vector<64x128xf32>
    %cst_56 = arith.constant dense<0.000000e+00> : vector<2x128xf32>
    %201 = tpu.matmul %199, %200, %cst_56 {dimension_numbers = #tpu.dot_dimension_numbers<[1], [0], [0], [1], [0, 0, 1, 1], [], []>} : vector<2x64xf32>, vector<64x128xf32>, vector<2x128xf32> -> vector<2x128xf32>
    %c0_57 = arith.constant 0 : index
    %c0_58 = arith.constant 0 : index
    %202 = vector.load %arg4[%c0_57, %c0_58] : memref<1x128xf32, #tpu.memory_space<vmem>>, vector<1x128xf32>
    %203 = vector.broadcast %202 : vector<1x128xf32> to vector<2x128xf32>
    %204 = arith.addf %201, %203 : vector<2x128xf32>
    %205 = math.tanh %204 : vector<2x128xf32>
    %206 = arith.negf %204 : vector<2x128xf32>
    %207 = math.exp %206 : vector<2x128xf32>
    %cst_59 = arith.constant 1.000000e+00 : f32
    %208 = vector.broadcast %cst_59 : f32 to vector<2x128xf32>
    %209 = arith.addf %208, %207 : vector<2x128xf32>
    %210 = arith.divf %208, %209 : vector<2x128xf32>
    %211 = arith.select %8, %205, %210 : vector<2x128xi1>, vector<2x128xf32>
    %212 = vector.extract_strided_slice %211 {offsets = [0, 0], sizes = [2, 32], strides = [1, 1]} : vector<2x128xf32> to vector<2x32xf32>
    %213 = vector.extract_strided_slice %211 {offsets = [0, 32], sizes = [2, 32], strides = [1, 1]} : vector<2x128xf32> to vector<2x32xf32>
    %214 = vector.extract_strided_slice %211 {offsets = [0, 64], sizes = [2, 32], strides = [1, 1]} : vector<2x128xf32> to vector<2x32xf32>
    %215 = vector.extract_strided_slice %211 {offsets = [0, 96], sizes = [2, 32], strides = [1, 1]} : vector<2x128xf32> to vector<2x32xf32>
    %216 = arith.mulf %213, %196 : vector<2x32xf32>
    %217 = arith.mulf %212, %214 : vector<2x32xf32>
    %218 = arith.addf %216, %217 : vector<2x32xf32>
    %219 = math.tanh %218 : vector<2x32xf32>
    %220 = arith.mulf %215, %219 : vector<2x32xf32>
    %221 = tpu.concatenate %106, %220 in 1 : vector<2x32xf32>, vector<2x32xf32> -> vector<2x64xf32>
    %c0_60 = arith.constant 0 : index
    %c0_61 = arith.constant 0 : index
    %222 = vector.load %arg3[%c0_60, %c0_61] : memref<64x128xf32, #tpu.memory_space<vmem>>, vector<64x128xf32>
    %cst_62 = arith.constant dense<0.000000e+00> : vector<2x128xf32>
    %223 = tpu.matmul %221, %222, %cst_62 {dimension_numbers = #tpu.dot_dimension_numbers<[1], [0], [0], [1], [0, 0, 1, 1], [], []>} : vector<2x64xf32>, vector<64x128xf32>, vector<2x128xf32> -> vector<2x128xf32>
    %c0_63 = arith.constant 0 : index
    %c0_64 = arith.constant 0 : index
    %224 = vector.load %arg4[%c0_63, %c0_64] : memref<1x128xf32, #tpu.memory_space<vmem>>, vector<1x128xf32>
    %225 = vector.broadcast %224 : vector<1x128xf32> to vector<2x128xf32>
    %226 = arith.addf %223, %225 : vector<2x128xf32>
    %227 = math.tanh %226 : vector<2x128xf32>
    %228 = arith.negf %226 : vector<2x128xf32>
    %229 = math.exp %228 : vector<2x128xf32>
    %cst_65 = arith.constant 1.000000e+00 : f32
    %230 = vector.broadcast %cst_65 : f32 to vector<2x128xf32>
    %231 = arith.addf %230, %229 : vector<2x128xf32>
    %232 = arith.divf %230, %231 : vector<2x128xf32>
    %233 = arith.select %8, %227, %232 : vector<2x128xi1>, vector<2x128xf32>
    %234 = vector.extract_strided_slice %233 {offsets = [0, 0], sizes = [2, 32], strides = [1, 1]} : vector<2x128xf32> to vector<2x32xf32>
    %235 = vector.extract_strided_slice %233 {offsets = [0, 32], sizes = [2, 32], strides = [1, 1]} : vector<2x128xf32> to vector<2x32xf32>
    %236 = vector.extract_strided_slice %233 {offsets = [0, 64], sizes = [2, 32], strides = [1, 1]} : vector<2x128xf32> to vector<2x32xf32>
    %237 = vector.extract_strided_slice %233 {offsets = [0, 96], sizes = [2, 32], strides = [1, 1]} : vector<2x128xf32> to vector<2x32xf32>
    %238 = arith.mulf %235, %218 : vector<2x32xf32>
    %239 = arith.mulf %234, %236 : vector<2x32xf32>
    %240 = arith.addf %238, %239 : vector<2x32xf32>
    %241 = math.tanh %240 : vector<2x32xf32>
    %242 = arith.mulf %237, %241 : vector<2x32xf32>
    %243 = tpu.concatenate %130, %242 in 1 : vector<2x32xf32>, vector<2x32xf32> -> vector<2x64xf32>
    %c0_66 = arith.constant 0 : index
    %c0_67 = arith.constant 0 : index
    %244 = vector.load %arg3[%c0_66, %c0_67] : memref<64x128xf32, #tpu.memory_space<vmem>>, vector<64x128xf32>
    %cst_68 = arith.constant dense<0.000000e+00> : vector<2x128xf32>
    %245 = tpu.matmul %243, %244, %cst_68 {dimension_numbers = #tpu.dot_dimension_numbers<[1], [0], [0], [1], [0, 0, 1, 1], [], []>} : vector<2x64xf32>, vector<64x128xf32>, vector<2x128xf32> -> vector<2x128xf32>
    %c0_69 = arith.constant 0 : index
    %c0_70 = arith.constant 0 : index
    %246 = vector.load %arg4[%c0_69, %c0_70] : memref<1x128xf32, #tpu.memory_space<vmem>>, vector<1x128xf32>
    %247 = vector.broadcast %246 : vector<1x128xf32> to vector<2x128xf32>
    %248 = arith.addf %245, %247 : vector<2x128xf32>
    %249 = math.tanh %248 : vector<2x128xf32>
    %250 = arith.negf %248 : vector<2x128xf32>
    %251 = math.exp %250 : vector<2x128xf32>
    %cst_71 = arith.constant 1.000000e+00 : f32
    %252 = vector.broadcast %cst_71 : f32 to vector<2x128xf32>
    %253 = arith.addf %252, %251 : vector<2x128xf32>
    %254 = arith.divf %252, %253 : vector<2x128xf32>
    %255 = arith.select %8, %249, %254 : vector<2x128xi1>, vector<2x128xf32>
    %256 = vector.extract_strided_slice %255 {offsets = [0, 0], sizes = [2, 32], strides = [1, 1]} : vector<2x128xf32> to vector<2x32xf32>
    %257 = vector.extract_strided_slice %255 {offsets = [0, 32], sizes = [2, 32], strides = [1, 1]} : vector<2x128xf32> to vector<2x32xf32>
    %258 = vector.extract_strided_slice %255 {offsets = [0, 64], sizes = [2, 32], strides = [1, 1]} : vector<2x128xf32> to vector<2x32xf32>
    %259 = vector.extract_strided_slice %255 {offsets = [0, 96], sizes = [2, 32], strides = [1, 1]} : vector<2x128xf32> to vector<2x32xf32>
    %260 = arith.mulf %257, %240 : vector<2x32xf32>
    %261 = arith.mulf %256, %258 : vector<2x32xf32>
    %262 = arith.addf %260, %261 : vector<2x32xf32>
    %263 = math.tanh %262 : vector<2x32xf32>
    %264 = arith.mulf %259, %263 : vector<2x32xf32>
    %265 = tpu.concatenate %154, %264 in 1 : vector<2x32xf32>, vector<2x32xf32> -> vector<2x64xf32>
    %c0_72 = arith.constant 0 : index
    %c0_73 = arith.constant 0 : index
    %266 = vector.load %arg3[%c0_72, %c0_73] : memref<64x128xf32, #tpu.memory_space<vmem>>, vector<64x128xf32>
    %cst_74 = arith.constant dense<0.000000e+00> : vector<2x128xf32>
    %267 = tpu.matmul %265, %266, %cst_74 {dimension_numbers = #tpu.dot_dimension_numbers<[1], [0], [0], [1], [0, 0, 1, 1], [], []>} : vector<2x64xf32>, vector<64x128xf32>, vector<2x128xf32> -> vector<2x128xf32>
    %c0_75 = arith.constant 0 : index
    %c0_76 = arith.constant 0 : index
    %268 = vector.load %arg4[%c0_75, %c0_76] : memref<1x128xf32, #tpu.memory_space<vmem>>, vector<1x128xf32>
    %269 = vector.broadcast %268 : vector<1x128xf32> to vector<2x128xf32>
    %270 = arith.addf %267, %269 : vector<2x128xf32>
    %271 = math.tanh %270 : vector<2x128xf32>
    %272 = arith.negf %270 : vector<2x128xf32>
    %273 = math.exp %272 : vector<2x128xf32>
    %cst_77 = arith.constant 1.000000e+00 : f32
    %274 = vector.broadcast %cst_77 : f32 to vector<2x128xf32>
    %275 = arith.addf %274, %273 : vector<2x128xf32>
    %276 = arith.divf %274, %275 : vector<2x128xf32>
    %277 = arith.select %8, %271, %276 : vector<2x128xi1>, vector<2x128xf32>
    %278 = vector.extract_strided_slice %277 {offsets = [0, 0], sizes = [2, 32], strides = [1, 1]} : vector<2x128xf32> to vector<2x32xf32>
    %279 = vector.extract_strided_slice %277 {offsets = [0, 32], sizes = [2, 32], strides = [1, 1]} : vector<2x128xf32> to vector<2x32xf32>
    %280 = vector.extract_strided_slice %277 {offsets = [0, 64], sizes = [2, 32], strides = [1, 1]} : vector<2x128xf32> to vector<2x32xf32>
    %281 = vector.extract_strided_slice %277 {offsets = [0, 96], sizes = [2, 32], strides = [1, 1]} : vector<2x128xf32> to vector<2x32xf32>
    %282 = arith.mulf %279, %262 : vector<2x32xf32>
    %283 = arith.mulf %278, %280 : vector<2x32xf32>
    %284 = arith.addf %282, %283 : vector<2x32xf32>
    %285 = math.tanh %284 : vector<2x32xf32>
    %286 = arith.mulf %281, %285 : vector<2x32xf32>
    %287 = vector.broadcast %1 : vector<1x32xf32> to vector<2x32xf32>
    %288 = arith.mulf %286, %287 : vector<2x32xf32>
    %cst_78 = arith.constant dense<0.000000e+00> : vector<2xf32>
    %289 = vector.multi_reduction <add>, %288, %cst_78 [1] : vector<2x32xf32> to vector<2xf32>
    %290 = vector.shape_cast %289 : vector<2xf32> to vector<2x1xf32>
    %291 = vector.broadcast %2 : vector<1x1xf32> to vector<2x1xf32>
    %292 = arith.addf %290, %291 : vector<2x1xf32>
    %293 = vector.extract_strided_slice %0 {offsets = [0, 6, 0], sizes = [2, 1, 8], strides = [1, 1, 1]} : vector<2x10x8xf32> to vector<2x1x8xf32>
    %294 = vector.shape_cast %293 : vector<2x1x8xf32> to vector<2x8xf32>
    %c0_i32 = arith.constant 0 : i32
    %295 = vector.broadcast %c0_i32 : i32 to vector<2x8xi32>
    %296 = arith.cmpi eq, %9, %295 : vector<2x8xi32>
    %297 = vector.shape_cast %292 : vector<2x1xf32> to vector<2x1xf32>
    %298 = vector.broadcast %297 : vector<2x1xf32> to vector<2x8xf32>
    %299 = arith.select %296, %298, %294 : vector<2x8xi1>, vector<2x8xf32>
    %300 = tpu.concatenate %299, %286 in 1 : vector<2x8xf32>, vector<2x32xf32> -> vector<2x40xf32>
    %c0_79 = arith.constant 0 : index
    %c0_80 = arith.constant 0 : index
    %301 = vector.load %arg5[%c0_79, %c0_80] : memref<40x128xf32, #tpu.memory_space<vmem>>, vector<40x128xf32>
    %cst_81 = arith.constant dense<0.000000e+00> : vector<2x128xf32>
    %302 = tpu.matmul %300, %301, %cst_81 {dimension_numbers = #tpu.dot_dimension_numbers<[1], [0], [0], [1], [0, 0, 1, 1], [], []>} : vector<2x40xf32>, vector<40x128xf32>, vector<2x128xf32> -> vector<2x128xf32>
    %c0_82 = arith.constant 0 : index
    %c0_83 = arith.constant 0 : index
    %303 = vector.load %arg6[%c0_82, %c0_83] : memref<1x128xf32, #tpu.memory_space<vmem>>, vector<1x128xf32>
    %304 = vector.broadcast %303 : vector<1x128xf32> to vector<2x128xf32>
    %305 = arith.addf %302, %304 : vector<2x128xf32>
    %306 = math.tanh %305 : vector<2x128xf32>
    %307 = arith.negf %305 : vector<2x128xf32>
    %308 = math.exp %307 : vector<2x128xf32>
    %cst_84 = arith.constant 1.000000e+00 : f32
    %309 = vector.broadcast %cst_84 : f32 to vector<2x128xf32>
    %310 = arith.addf %309, %308 : vector<2x128xf32>
    %311 = arith.divf %309, %310 : vector<2x128xf32>
    %312 = arith.select %8, %306, %311 : vector<2x128xi1>, vector<2x128xf32>
    %313 = vector.extract_strided_slice %312 {offsets = [0, 0], sizes = [2, 32], strides = [1, 1]} : vector<2x128xf32> to vector<2x32xf32>
    %314 = vector.extract_strided_slice %312 {offsets = [0, 32], sizes = [2, 32], strides = [1, 1]} : vector<2x128xf32> to vector<2x32xf32>
    %315 = vector.extract_strided_slice %312 {offsets = [0, 64], sizes = [2, 32], strides = [1, 1]} : vector<2x128xf32> to vector<2x32xf32>
    %316 = vector.extract_strided_slice %312 {offsets = [0, 96], sizes = [2, 32], strides = [1, 1]} : vector<2x128xf32> to vector<2x32xf32>
    %317 = arith.mulf %314, %284 : vector<2x32xf32>
    %318 = arith.mulf %313, %315 : vector<2x32xf32>
    %319 = arith.addf %317, %318 : vector<2x32xf32>
    %320 = math.tanh %319 : vector<2x32xf32>
    %321 = arith.mulf %316, %320 : vector<2x32xf32>
    %322 = vector.broadcast %1 : vector<1x32xf32> to vector<2x32xf32>
    %323 = arith.mulf %321, %322 : vector<2x32xf32>
    %cst_85 = arith.constant dense<0.000000e+00> : vector<2xf32>
    %324 = vector.multi_reduction <add>, %323, %cst_85 [1] : vector<2x32xf32> to vector<2xf32>
    %325 = vector.shape_cast %324 : vector<2xf32> to vector<2x1xf32>
    %326 = vector.broadcast %2 : vector<1x1xf32> to vector<2x1xf32>
    %327 = arith.addf %325, %326 : vector<2x1xf32>
    %328 = vector.extract_strided_slice %0 {offsets = [0, 7, 0], sizes = [2, 1, 8], strides = [1, 1, 1]} : vector<2x10x8xf32> to vector<2x1x8xf32>
    %329 = vector.shape_cast %328 : vector<2x1x8xf32> to vector<2x8xf32>
    %c0_i32_86 = arith.constant 0 : i32
    %330 = vector.broadcast %c0_i32_86 : i32 to vector<2x8xi32>
    %331 = arith.cmpi eq, %9, %330 : vector<2x8xi32>
    %332 = vector.shape_cast %327 : vector<2x1xf32> to vector<2x1xf32>
    %333 = vector.broadcast %332 : vector<2x1xf32> to vector<2x8xf32>
    %334 = arith.select %331, %333, %329 : vector<2x8xi1>, vector<2x8xf32>
    %335 = tpu.concatenate %334, %321 in 1 : vector<2x8xf32>, vector<2x32xf32> -> vector<2x40xf32>
    %c0_87 = arith.constant 0 : index
    %c0_88 = arith.constant 0 : index
    %336 = vector.load %arg5[%c0_87, %c0_88] : memref<40x128xf32, #tpu.memory_space<vmem>>, vector<40x128xf32>
    %cst_89 = arith.constant dense<0.000000e+00> : vector<2x128xf32>
    %337 = tpu.matmul %335, %336, %cst_89 {dimension_numbers = #tpu.dot_dimension_numbers<[1], [0], [0], [1], [0, 0, 1, 1], [], []>} : vector<2x40xf32>, vector<40x128xf32>, vector<2x128xf32> -> vector<2x128xf32>
    %c0_90 = arith.constant 0 : index
    %c0_91 = arith.constant 0 : index
    %338 = vector.load %arg6[%c0_90, %c0_91] : memref<1x128xf32, #tpu.memory_space<vmem>>, vector<1x128xf32>
    %339 = vector.broadcast %338 : vector<1x128xf32> to vector<2x128xf32>
    %340 = arith.addf %337, %339 : vector<2x128xf32>
    %341 = math.tanh %340 : vector<2x128xf32>
    %342 = arith.negf %340 : vector<2x128xf32>
    %343 = math.exp %342 : vector<2x128xf32>
    %cst_92 = arith.constant 1.000000e+00 : f32
    %344 = vector.broadcast %cst_92 : f32 to vector<2x128xf32>
    %345 = arith.addf %344, %343 : vector<2x128xf32>
    %346 = arith.divf %344, %345 : vector<2x128xf32>
    %347 = arith.select %8, %341, %346 : vector<2x128xi1>, vector<2x128xf32>
    %348 = vector.extract_strided_slice %347 {offsets = [0, 0], sizes = [2, 32], strides = [1, 1]} : vector<2x128xf32> to vector<2x32xf32>
    %349 = vector.extract_strided_slice %347 {offsets = [0, 32], sizes = [2, 32], strides = [1, 1]} : vector<2x128xf32> to vector<2x32xf32>
    %350 = vector.extract_strided_slice %347 {offsets = [0, 64], sizes = [2, 32], strides = [1, 1]} : vector<2x128xf32> to vector<2x32xf32>
    %351 = vector.extract_strided_slice %347 {offsets = [0, 96], sizes = [2, 32], strides = [1, 1]} : vector<2x128xf32> to vector<2x32xf32>
    %352 = arith.mulf %349, %319 : vector<2x32xf32>
    %353 = arith.mulf %348, %350 : vector<2x32xf32>
    %354 = arith.addf %352, %353 : vector<2x32xf32>
    %355 = math.tanh %354 : vector<2x32xf32>
    %356 = arith.mulf %351, %355 : vector<2x32xf32>
    %357 = vector.broadcast %1 : vector<1x32xf32> to vector<2x32xf32>
    %358 = arith.mulf %356, %357 : vector<2x32xf32>
    %cst_93 = arith.constant dense<0.000000e+00> : vector<2xf32>
    %359 = vector.multi_reduction <add>, %358, %cst_93 [1] : vector<2x32xf32> to vector<2xf32>
    %360 = vector.shape_cast %359 : vector<2xf32> to vector<2x1xf32>
    %361 = vector.broadcast %2 : vector<1x1xf32> to vector<2x1xf32>
    %362 = arith.addf %360, %361 : vector<2x1xf32>
    %363 = vector.extract_strided_slice %0 {offsets = [0, 8, 0], sizes = [2, 1, 8], strides = [1, 1, 1]} : vector<2x10x8xf32> to vector<2x1x8xf32>
    %364 = vector.shape_cast %363 : vector<2x1x8xf32> to vector<2x8xf32>
    %c0_i32_94 = arith.constant 0 : i32
    %365 = vector.broadcast %c0_i32_94 : i32 to vector<2x8xi32>
    %366 = arith.cmpi eq, %9, %365 : vector<2x8xi32>
    %367 = vector.shape_cast %362 : vector<2x1xf32> to vector<2x1xf32>
    %368 = vector.broadcast %367 : vector<2x1xf32> to vector<2x8xf32>
    %369 = arith.select %366, %368, %364 : vector<2x8xi1>, vector<2x8xf32>
    %370 = tpu.concatenate %369, %356 in 1 : vector<2x8xf32>, vector<2x32xf32> -> vector<2x40xf32>
    %c0_95 = arith.constant 0 : index
    %c0_96 = arith.constant 0 : index
    %371 = vector.load %arg5[%c0_95, %c0_96] : memref<40x128xf32, #tpu.memory_space<vmem>>, vector<40x128xf32>
    %cst_97 = arith.constant dense<0.000000e+00> : vector<2x128xf32>
    %372 = tpu.matmul %370, %371, %cst_97 {dimension_numbers = #tpu.dot_dimension_numbers<[1], [0], [0], [1], [0, 0, 1, 1], [], []>} : vector<2x40xf32>, vector<40x128xf32>, vector<2x128xf32> -> vector<2x128xf32>
    %c0_98 = arith.constant 0 : index
    %c0_99 = arith.constant 0 : index
    %373 = vector.load %arg6[%c0_98, %c0_99] : memref<1x128xf32, #tpu.memory_space<vmem>>, vector<1x128xf32>
    %374 = vector.broadcast %373 : vector<1x128xf32> to vector<2x128xf32>
    %375 = arith.addf %372, %374 : vector<2x128xf32>
    %376 = math.tanh %375 : vector<2x128xf32>
    %377 = arith.negf %375 : vector<2x128xf32>
    %378 = math.exp %377 : vector<2x128xf32>
    %cst_100 = arith.constant 1.000000e+00 : f32
    %379 = vector.broadcast %cst_100 : f32 to vector<2x128xf32>
    %380 = arith.addf %379, %378 : vector<2x128xf32>
    %381 = arith.divf %379, %380 : vector<2x128xf32>
    %382 = arith.select %8, %376, %381 : vector<2x128xi1>, vector<2x128xf32>
    %383 = vector.extract_strided_slice %382 {offsets = [0, 0], sizes = [2, 32], strides = [1, 1]} : vector<2x128xf32> to vector<2x32xf32>
    %384 = vector.extract_strided_slice %382 {offsets = [0, 32], sizes = [2, 32], strides = [1, 1]} : vector<2x128xf32> to vector<2x32xf32>
    %385 = vector.extract_strided_slice %382 {offsets = [0, 64], sizes = [2, 32], strides = [1, 1]} : vector<2x128xf32> to vector<2x32xf32>
    %386 = vector.extract_strided_slice %382 {offsets = [0, 96], sizes = [2, 32], strides = [1, 1]} : vector<2x128xf32> to vector<2x32xf32>
    %387 = arith.mulf %384, %354 : vector<2x32xf32>
    %388 = arith.mulf %383, %385 : vector<2x32xf32>
    %389 = arith.addf %387, %388 : vector<2x32xf32>
    %390 = math.tanh %389 : vector<2x32xf32>
    %391 = arith.mulf %386, %390 : vector<2x32xf32>
    %392 = vector.broadcast %1 : vector<1x32xf32> to vector<2x32xf32>
    %393 = arith.mulf %391, %392 : vector<2x32xf32>
    %cst_101 = arith.constant dense<0.000000e+00> : vector<2xf32>
    %394 = vector.multi_reduction <add>, %393, %cst_101 [1] : vector<2x32xf32> to vector<2xf32>
    %395 = vector.shape_cast %394 : vector<2xf32> to vector<2x1xf32>
    %396 = vector.broadcast %2 : vector<1x1xf32> to vector<2x1xf32>
    %397 = arith.addf %395, %396 : vector<2x1xf32>
    %398 = vector.extract_strided_slice %0 {offsets = [0, 9, 0], sizes = [2, 1, 8], strides = [1, 1, 1]} : vector<2x10x8xf32> to vector<2x1x8xf32>
    %399 = vector.shape_cast %398 : vector<2x1x8xf32> to vector<2x8xf32>
    %c0_i32_102 = arith.constant 0 : i32
    %400 = vector.broadcast %c0_i32_102 : i32 to vector<2x8xi32>
    %401 = arith.cmpi eq, %9, %400 : vector<2x8xi32>
    %402 = vector.shape_cast %397 : vector<2x1xf32> to vector<2x1xf32>
    %403 = vector.broadcast %402 : vector<2x1xf32> to vector<2x8xf32>
    %404 = arith.select %401, %403, %399 : vector<2x8xi1>, vector<2x8xf32>
    %405 = tpu.concatenate %404, %391 in 1 : vector<2x8xf32>, vector<2x32xf32> -> vector<2x40xf32>
    %c0_103 = arith.constant 0 : index
    %c0_104 = arith.constant 0 : index
    %406 = vector.load %arg5[%c0_103, %c0_104] : memref<40x128xf32, #tpu.memory_space<vmem>>, vector<40x128xf32>
    %cst_105 = arith.constant dense<0.000000e+00> : vector<2x128xf32>
    %407 = tpu.matmul %405, %406, %cst_105 {dimension_numbers = #tpu.dot_dimension_numbers<[1], [0], [0], [1], [0, 0, 1, 1], [], []>} : vector<2x40xf32>, vector<40x128xf32>, vector<2x128xf32> -> vector<2x128xf32>
    %c0_106 = arith.constant 0 : index
    %c0_107 = arith.constant 0 : index
    %408 = vector.load %arg6[%c0_106, %c0_107] : memref<1x128xf32, #tpu.memory_space<vmem>>, vector<1x128xf32>
    %409 = vector.broadcast %408 : vector<1x128xf32> to vector<2x128xf32>
    %410 = arith.addf %407, %409 : vector<2x128xf32>
    %411 = math.tanh %410 : vector<2x128xf32>
    %412 = arith.negf %410 : vector<2x128xf32>
    %413 = math.exp %412 : vector<2x128xf32>
    %cst_108 = arith.constant 1.000000e+00 : f32
    %414 = vector.broadcast %cst_108 : f32 to vector<2x128xf32>
    %415 = arith.addf %414, %413 : vector<2x128xf32>
    %416 = arith.divf %414, %415 : vector<2x128xf32>
    %417 = arith.select %8, %411, %416 : vector<2x128xi1>, vector<2x128xf32>
    %418 = vector.extract_strided_slice %417 {offsets = [0, 0], sizes = [2, 32], strides = [1, 1]} : vector<2x128xf32> to vector<2x32xf32>
    %419 = vector.extract_strided_slice %417 {offsets = [0, 32], sizes = [2, 32], strides = [1, 1]} : vector<2x128xf32> to vector<2x32xf32>
    %420 = vector.extract_strided_slice %417 {offsets = [0, 64], sizes = [2, 32], strides = [1, 1]} : vector<2x128xf32> to vector<2x32xf32>
    %421 = vector.extract_strided_slice %417 {offsets = [0, 96], sizes = [2, 32], strides = [1, 1]} : vector<2x128xf32> to vector<2x32xf32>
    %422 = arith.mulf %419, %389 : vector<2x32xf32>
    %423 = arith.mulf %418, %420 : vector<2x32xf32>
    %424 = arith.addf %422, %423 : vector<2x32xf32>
    %425 = math.tanh %424 : vector<2x32xf32>
    %426 = arith.mulf %421, %425 : vector<2x32xf32>
    %427 = vector.broadcast %1 : vector<1x32xf32> to vector<2x32xf32>
    %428 = arith.mulf %426, %427 : vector<2x32xf32>
    %cst_109 = arith.constant dense<0.000000e+00> : vector<2xf32>
    %429 = vector.multi_reduction <add>, %428, %cst_109 [1] : vector<2x32xf32> to vector<2xf32>
    %430 = vector.shape_cast %429 : vector<2xf32> to vector<2x1xf32>
    %431 = vector.broadcast %2 : vector<1x1xf32> to vector<2x1xf32>
    %432 = arith.addf %430, %431 : vector<2x1xf32>
    %433 = tpu.concatenate %292, %327, %362, %397, %432 in 1 : vector<2x1xf32>, vector<2x1xf32>, vector<2x1xf32>, vector<2x1xf32>, vector<2x1xf32> -> vector<2x5xf32>
    %c0_110 = arith.constant 0 : index
    %c0_111 = arith.constant 0 : index
    %434 = vector.load %arg9[%c0_110, %c0_111] : memref<2x5xf32, #tpu.memory_space<vmem>>, vector<2x5xf32>
    tpu.vector_store %arg9[%c0_110, %c0_111], %433 {strides = array<i32>} : memref<2x5xf32, #tpu.memory_space<vmem>>, vector<2x5xf32>,
    return
  }
}

</mosaic_0001>

<bundles_post_ra>
// kernel: pallas_forward.1
= control target key start
LH: loop header
LB: loop body
LE: loop exit
PB: predicated region body
PF: predicated region fallthrough
CT: control target
= control target key end

     0   :  { %s2061_s0 = inlined_call_operand.vmem [shape: f32[2,10,8], index: 0, kind: input, shape index: {}]   ;;  %s2062_s1 = inlined_call_operand.vmem [shape: f32[40,128], index: 1, kind: input, shape index: {}]   ;;  %s2063_s2 = inlined_call_operand.vmem [shape: f32[1,128], index: 2, kind: input, shape index: {}]   ;;  %s2064_s3 = inlined_call_operand.hbm [shape: f32[64,128], index: 3, kind: input, shape index: {}]   ;;  %s2065_s4 = inlined_call_operand.vmem [shape: f32[1,128], index: 4, kind: input, shape index: {}]   ;;  %s2066_s5 = inlined_call_operand.hbm [shape: f32[40,128], index: 5, kind: input, shape index: {}]   ;;  %s2067_s6 = inlined_call_operand.vmem [shape: f32[1,128], index: 6, kind: input, shape index: {}]   ;;  %s2068_s7 = inlined_call_operand.vmem [shape: f32[1,32], index: 7, kind: input, shape index: {}]   ;;  %s2069_s8 = inlined_call_operand.<no memory space> [shape: f32[1,1], index: 8, kind: input, shape index: {}]   ;;  %s2070_s9 = inlined_call_operand.hbm [shape: f32[2,5], index: 9, kind: output, shape index: {}]  }
   0x1   :  { %v14_v0 = vstv %s2069_s8 }
   0x2   :  { %15 = vst [vmem:[#allocation2] sm:$0x1] %v14_v0 }
   0x3   :  { %16 = vsyncpa [#allocation4], 0 }
   0x4   :  { %17 = vsyncpa [#allocation7], 0 }
   0x5   :  { %18 = vsyncpa [#allocation5], 0  ;;  %s29_s13 = sshll.u32 %s2064_s3, 4  ;;  %s1608_s14 = smov [#allocation3]   ;;  %s30_s13 = int_to_ptr.hbm [resolvable:$true] %s29_s13 }
   0x6   :  { %s31_s15 = sshll.u32 %s1608_s14, 4  ;;  %s44_s18 = sshll.u32 %s2066_s5, 4  ;;  %s32_s15 = int_to_ptr.vmem [resolvable:$true] %s31_s15  ;;  %s45_s18 = int_to_ptr.hbm [resolvable:$true] %s44_s18 }
   0x7   :  { %s1609_s19 = smov 128   ;;  %s1610_s20 = smov 8  }
   0x8   :  { %37 = dma.hbm_to_vmem [thread:$0]  %s30_s13, 1024, %s32_s15, [#allocation4], %s1609_s19, %s1609_s19, %s1610_s20  }
   0x9   :  { %s1611_s8 = smov [#allocation6]  }
   0xa   :  { %s46_s21 = sshll.u32 %s1611_s8, 4  ;;  %s47_s21 = int_to_ptr.vmem [resolvable:$true] %s46_s21 }
   0xb   :  { %52 = dma.hbm_to_vmem [thread:$0]  %s45_s18, 640, %s47_s21, [#allocation7], %s1609_s19, %s1609_s19, %s1610_s20  }
   0xc   :  { %1602 = dma.done.wait [#allocation4], 1024  }
   0xd   :  { %1603 = vsyncadd [#allocation4], 4294966272 }
   0xe   :  { %1604 = dma.done.wait [#allocation7], 640  }
   0xf   :  { %1605 = vsyncadd [#allocation7], 4294966656  ;;  %v90_v1 = vld [vmem:[%s2062_s1 + $0x20] sm:$0xff]  ;;  %v89_v2 = vld [vmem:[%s2062_s1 + $0x18] sm:$0xff]  ;;  %vm81_vm0 = vcmask 1041409   ;;  %vm84_vm1 = vcmask 64512   ;;  %v73_v17 = vlaneseq }
  0x10   :  { %110 = vmatpush.msra.mxu0 %v90_v1  ;;  %v88_v3 = vld [vmem:[%s2062_s1 + $0x10] sm:$0xff]  ;;  %181 = vmatpush.msra.mxu1 %v90_v1  ;;  %v1693_v4 = vld [vmem:[%s2061_s0] sm:$0xff]  ;;  %v87_v7 = vld [vmem:[%s2062_s1 + $0x8] sm:$0xff]  ;;  %vm95_vm2 = vcmask 326656   ;;  %s1613_s14 = smov 32   ;;  %s1614_s15 = smov 40  }
  0x11   :  { %v69_v5 = vld [vmem:[%s2061_s0 + $0x10] sm:$0xff]  ;;  %252 = vmatpush.msra.mxu2 %v90_v1  ;;  %323 = vmatpush.msra.mxu3 %v90_v1  ;;  %v86_v9 = vld [vmem:[%s2062_s1] sm:$0xff]  ;;  %v1717_v19 = vand.u32 127, %v73_v17  ;;  %vm157_vm10 = vcmask 1042434   ;;  %vm228_vm15 = vcmask 1043459   ;;  %s1615_s19 = smov 96  }
  0x12   :  { %111 = vmatpush.msra.mxu0 %v89_v2  ;;  %v1698_v6 = vrot.slane %v69_v5, 7  ;;  %182 = vmatpush.msra.mxu1 %v89_v2  ;;  %v1714_v11 = vld [vmem:[%s2063_s2] ss:$0 sm:$0xff]  ;;  %s1612_s2 = smov 64   ;;  %v1785_v17 = vld [vmem:[#allocation3] sm:$0xff]  ;;  %s1618_s25 = smov 1  }
  0x13   :  { %253 = vmatpush.msra.mxu2 %v89_v2  ;;  %324 = vmatpush.msra.mxu3 %v89_v2  ;;  %vm75_vm3 = vcmp.ge.s32.totalorder %v1717_v19, 64  ;;  %vm76_vm4 = vcmp.lt.s32.totalorder %v1717_v19, 96  ;;  %v1745_v5 = vld [vmem:[#allocation3 + $0x38] sm:$0xff]  ;;  %s1619_s26 = smov 3   ;;  %s1620_s27 = smov 4  }
  0x14   :  { %112 = vmatpush.msra.mxu0 %v88_v3  ;;  %v82_v8 = vsel %vm81_vm0, %v1698_v6, %v1693_v4  ;;  %183 = vmatpush.msra.mxu1 %v88_v3  ;;  %vm1721_vm6 = vmand %vm75_vm3, %vm76_vm4  ;;  %v158_v41 = vsel %vm157_vm10, %v1698_v6, %v1693_v4  ;;  %vm515_vm3 = vcmask 261120   ;;  %vm529_vm4 = vcmask 523264   ;;  %s1621_s28 = smov [#allocation8]   ;;  %s1335_s11 = sshll.u32 %s2070_s9, 4  ;;  %s1336_s11 = int_to_ptr.hbm [resolvable:$true] %s1335_s11 }
  0x15   :  { %254 = vmatpush.msra.mxu2 %v88_v3  ;;  %325 = vmatpush.msra.mxu3 %v88_v3  ;;  %v85_v10 = vsel %vm84_vm1, %v82_v8, 0.0  ;;  %s1333_s29 = sshll.u32 %s1621_s28, 4  ;;  %s1334_s29 = int_to_ptr.vmem [resolvable:$true] %s1333_s29 }
  0x16   :  { %113 = vmatpush.msra.mxu0 %v87_v7  ;;  %184 = vmatpush.msra.mxu1 %v87_v7 }
  0x17   :  { %255 = vmatpush.msra.mxu2 %v87_v7  ;;  %326 = vmatpush.msra.mxu3 %v87_v7 }
  0x18   :  { %114 = vmatpush.msra.mxu0 %v86_v9  ;;  %185 = vmatpush.msra.mxu1 %v86_v9 }
  0x19   :  { %1346 = vmatmul.msk.f32.vlgmr.msra.gmra.mxu0 %vm95_vm2, %v85_v10  ;;  %256 = vmatpush.msra.mxu2 %v86_v9 }
  0x1a   :  { %327 = vmatpush.msra.mxu3 %v86_v9  ;;  %394 = vmatpush.msrb.mxu0 %v90_v1 }
  0x1b   :  { %465 = vmatpush.msrb.mxu1 %v90_v1  ;;  %541 = vmatpush.msrb.mxu2 %v1745_v5 }
  0x1c   :  { %395 = vmatpush.msrb.mxu0 %v89_v2  ;;  %610 = vmatpush.msrb.mxu3 %v1745_v5 }
  0x1d   :  { %466 = vmatpush.msrb.mxu1 %v89_v2 }
  0x1e   :  { %396 = vmatpush.msrb.mxu0 %v88_v3 }
  0x1f   :  { %467 = vmatpush.msrb.mxu1 %v88_v3 }
  0x20   :  { %397 = vmatpush.msrb.mxu0 %v87_v7 }
  0x21   :  { %468 = vmatpush.msrb.mxu1 %v87_v7  ;;  %v1747_v7 = vld [vmem:[#allocation3 + $0x30] sm:$0xff] }
  0x22   :  { %398 = vmatpush.msrb.mxu0 %v86_v9  ;;  %542 = vmatpush.msrb.mxu2 %v1747_v7 }
  0x23   :  { %469 = vmatpush.msrb.mxu1 %v86_v9  ;;  %611 = vmatpush.msrb.mxu3 %v1747_v7 }
  0x24   :  { %679 = vmatpush.msra.mxu0 %v1745_v5 }
  0x26   :  { %680 = vmatpush.msra.mxu0 %v1747_v7 }
  0x96   :  { %v116_v12 = vpop.f32.mrf.mxu0 }
  0x97   :  { %v117_v13 = vadd.f32 %v1714_v11, %v116_v12  ;;  %v1761_v12 = vld [vmem:[#allocation3 + $0x28] sm:$0xff] }
  0x98   :  { %543 = vmatpush.msrb.mxu2 %v1761_v12  ;;  %612 = vmatpush.msrb.mxu3 %v1761_v12 }
  0x99   :  { %v1347_v14 = vmul.f32 -1.442695, %v117_v13  ;;  %681 = vmatpush.msra.mxu0 %v1761_v12 }
  0x9b   :  { %1400 = vpow2.f32 %v1347_v14  ;;  %v1771_v14 = vld [vmem:[#allocation3 + $0x18] sm:$0xff] }
  0xa1   :  { %v1401_v15 = vpop.eup %1400 }
  0xa2   :  { %v123_v16 = vadd.f32 1.0, %v1401_v15  ;;  %v1773_v15 = vld [vmem:[#allocation3 + $0x10] sm:$0xff] }
  0xa4   :  { %1402 = vrcp.f32 %v123_v16  ;;  %v135_v22 = vand.u32 2147483648, %v123_v16  ;;  %v133_v24 = vand.u32 2147483647, %v123_v16  ;;  %vm129_vm7 = vweird.f32 %v123_v16 }
  0xa5   :  { %1404 = vtanh.f32 %v117_v13  ;;  %v1765_v13 = vld [vmem:[#allocation3 + $0x20] sm:$0xff] }
  0xa6   :  { %v136_v27 = vor.u32 1.1754944e-38, %v135_v22  ;;  %vm134_vm9 = vcmp.eq.f32.partialorder %v133_v24, 8.507059e+37  ;;  %544 = vmatpush.msrb.mxu2 %v1765_v13  ;;  %613 = vmatpush.msrb.mxu3 %v1765_v13 }
  0xa7   :  { %682 = vmatpush.msra.mxu0 %v1765_v13 }
  0xa8   :  { %545 = vmatpush.msrb.mxu2 %v1771_v14  ;;  %614 = vmatpush.msrb.mxu3 %v1771_v14 }
  0xa9   :  { %683 = vmatpush.msra.mxu0 %v1771_v14 }
  0xaa   :  { %v1403_v18 = vpop.eup %1402  ;;  %546 = vmatpush.msrb.mxu2 %v1773_v15  ;;  %615 = vmatpush.msrb.mxu3 %v1773_v15 }
  0xab   :  { %v125_v20 = vmul.f32 %v1403_v18, %v123_v16  ;;  %vm130_vm5 = vweird.f32 %v1403_v18  ;;  %v1405_v29 = vpop.eup %1404  ;;  %v1779_v16 = vld [vmem:[#allocation3 + $0x8] sm:$0xff]  ;;  %684 = vmatpush.msra.mxu0 %v1773_v15 }
  0xac   :  { %vm131_vm8 = vmor %vm129_vm7, %vm130_vm5  ;;  %547 = vmatpush.msrb.mxu2 %v1779_v16  ;;  %616 = vmatpush.msrb.mxu3 %v1779_v16 }
  0xad   :  { %v126_v21 = vsub.f32 1.0, %v125_v20  ;;  %685 = vmatpush.msra.mxu0 %v1779_v16 }
  0xae   :  { %548 = vmatpush.msrb.mxu2 %v1785_v17  ;;  %617 = vmatpush.msrb.mxu3 %v1785_v17 }
  0xaf   :  { %v127_v23 = vmul.f32 %v1403_v18, %v126_v21  ;;  %686 = vmatpush.msra.mxu0 %v1785_v17 }
  0xb1   :  { %v128_v26 = vadd.f32 %v1403_v18, %v127_v23 }
  0xb3   :  { %v132_v28 = vsel %vm131_vm8, %v1403_v18, %v128_v26  ;;  %v229_v18 = vsel %vm228_vm15, %v1698_v6, %v1693_v4 }
  0xb4   :  { %v137_v30 = vsel %vm134_vm9, %v136_v27, %v132_v28 }
  0xb5   :  { %v139_v31 = vsel %vm1721_vm6, %v1405_v29, %v137_v30  ;;  %v1815_v29 = vld [vmem:[%s2065_s4] ss:$0 sm:$0xff] }
  0xb6   :  { %142 = vrot.lane.b32.xlu0 %v139_v31, %s1612_s2  ;;  %v140_v34 = vmul.f32 0.0, %v139_v31 }
 0x128   :  { %v143_v32 = vpop.permute.xlu0 %142 }
 0x129   :  { %v145_v33 = vmul.f32 %v143_v32, %v139_v31 }
 0x12b   :  { %147 = vrot.lane.b32.xlu0 %v145_v33, %s1613_s14 }
 0x19d   :  { %v148_v35 = vpop.permute.xlu0 %147 }
 0x19e   :  { %v150_v36 = vadd.f32 %v148_v35, %v140_v34 }
 0x1a0   :  { %1406 = vtanh.f32 %v150_v36 }
 0x1a6   :  { %v1407_v37 = vpop.eup %1406 }
 0x1a7   :  { %153 = vrot.lane.b32.xlu1 %v1407_v37, %s1612_s2 }
 0x219   :  { %v154_v38 = vpop.permute.xlu1 %153 }
 0x21a   :  { %v156_v39 = vmul.f32 %v154_v38, %v139_v31 }
 0x21c   :  { %v161_v40 = vrot.slane %v156_v39, 7 }
 0x21e   :  { %162 = vrot.lane.b32.xlu1 %v161_v40, %s1614_s15 }
 0x290   :  { %v163_v42 = vpop.permute.xlu1 %162 }
 0x291   :  { %v165_v43 = vsel %vm84_vm1, %v158_v41, %v163_v42 }
 0x292   :  { %v167_v44 = vrot.slane %v165_v43, 1 }
 0x294   :  { %1348 = vmatmul.msk.f32.vlgmr.msra.gmra.mxu1 %vm95_vm2, %v167_v44 }
 0x295   :  { %748 = vmatpush.msra.mxu1 %v1745_v5 }
 0x297   :  { %749 = vmatpush.msra.mxu1 %v1747_v7 }
 0x299   :  { %750 = vmatpush.msra.mxu1 %v1761_v12 }
 0x29b   :  { %751 = vmatpush.msra.mxu1 %v1765_v13 }
 0x29d   :  { %752 = vmatpush.msra.mxu1 %v1771_v14 }
 0x29f   :  { %753 = vmatpush.msra.mxu1 %v1773_v15 }
 0x2a1   :  { %754 = vmatpush.msra.mxu1 %v1779_v16 }
 0x2a3   :  { %755 = vmatpush.msra.mxu1 %v1785_v17 }
 0x311   :  { %v187_v45 = vpop.f32.mrf.mxu1 }
 0x312   :  { %v188_v46 = vadd.f32 %v1714_v11, %v187_v45 }
 0x314   :  { %v1349_v47 = vmul.f32 -1.442695, %v188_v46 }
 0x316   :  { %1408 = vpow2.f32 %v1349_v47 }
 0x31c   :  { %v1409_v48 = vpop.eup %1408 }
 0x31d   :  { %v194_v49 = vadd.f32 1.0, %v1409_v48 }
 0x31f   :  { %1410 = vrcp.f32 %v194_v49  ;;  %v206_v53 = vand.u32 2147483648, %v194_v49  ;;  %v204_v55 = vand.u32 2147483647, %v194_v49  ;;  %vm200_vm12 = vweird.f32 %v194_v49 }
 0x320   :  { %1412 = vtanh.f32 %v188_v46 }
 0x321   :  { %v207_v57 = vor.u32 1.1754944e-38, %v206_v53  ;;  %vm205_vm14 = vcmp.eq.f32.partialorder %v204_v55, 8.507059e+37 }
 0x325   :  { %v1411_v50 = vpop.eup %1410 }
 0x326   :  { %v196_v51 = vmul.f32 %v1411_v50, %v194_v49  ;;  %vm201_vm11 = vweird.f32 %v1411_v50  ;;  %v1413_v59 = vpop.eup %1412 }
 0x327   :  { %vm202_vm13 = vmor %vm200_vm12, %vm201_vm11 }
 0x328   :  { %v197_v52 = vsub.f32 1.0, %v196_v51 }
 0x32a   :  { %v198_v54 = vmul.f32 %v1411_v50, %v197_v52 }
 0x32c   :  { %v199_v56 = vadd.f32 %v1411_v50, %v198_v54 }
 0x32e   :  { %v203_v58 = vsel %vm202_vm13, %v1411_v50, %v199_v56 }
 0x32f   :  { %v208_v60 = vsel %vm205_vm14, %v207_v57, %v203_v58  ;;  %vm299_vm14 = vcmask 1044484  }
 0x330   :  { %v210_v61 = vsel %vm1721_vm6, %v1413_v59, %v208_v60 }
 0x331   :  { %213 = vrot.lane.b32.xlu2 %v210_v61, %s1612_s2  ;;  %v211_v0 = vmul.f32 %v210_v61, %v150_v36 }
 0x38b   :  { %v214_v62 = vpop.permute.xlu2 %213 }
 0x38c   :  { %v216_v63 = vmul.f32 %v214_v62, %v210_v61 }
 0x38e   :  { %218 = vrot.lane.b32.xlu2 %v216_v63, %s1613_s14 }
 0x396   :  { %512 = vrot.lane.b32.xlu2 %v156_v39, %s1613_s14 }
 0x3e8   :  { %v219_v1 = vpop.permute.xlu2 %218 }
 0x3e9   :  { %v1741_v2 = vadd.f32 %v219_v1, %v211_v0 }
 0x3eb   :  { %1414 = vtanh.f32 %v1741_v2 }
 0x3f0   :  { %v513_v23 = vpop.permute.xlu2 %512 }
 0x3f1   :  { %v1415_v3 = vpop.eup %1414  ;;  %v516_v24 = vsel %vm515_vm3, %v513_v23, 0.0 }
 0x3f2   :  { %224 = vrot.lane.b32.xlu0 %v1415_v3, %s1612_s2 }
 0x464   :  { %v225_v8 = vpop.permute.xlu0 %224 }
 0x465   :  { %v1757_v9 = vmul.f32 %v225_v8, %v210_v61 }
 0x467   :  { %v232_v10 = vrot.slane %v1757_v9, 6 }
 0x469   :  { %233 = vrot.lane.b32.xlu1 %v232_v10, %s1614_s15 }
 0x4db   :  { %v234_v20 = vpop.permute.xlu1 %233 }
 0x4dc   :  { %v236_v21 = vsel %vm84_vm1, %v229_v18, %v234_v20 }
 0x4dd   :  { %v238_v22 = vrot.slane %v236_v21, 2 }
 0x4df   :  { %1350 = vmatmul.msk.f32.vlgmr.msra.gmra.mxu2 %vm95_vm2, %v238_v22 }
 0x4e0   :  { %817 = vmatpush.msra.mxu2 %v1745_v5 }
 0x4e2   :  { %818 = vmatpush.msra.mxu2 %v1747_v7 }
 0x4e4   :  { %819 = vmatpush.msra.mxu2 %v1761_v12 }
 0x4e6   :  { %820 = vmatpush.msra.mxu2 %v1765_v13 }
 0x4e7   :  { %1358 = vmatmul.msk.f32.vlgmr.msrb.gmra.mxu2 %vm529_vm4, %v516_v24 }
 0x4e8   :  { %821 = vmatpush.msra.mxu2 %v1771_v14 }
 0x4ea   :  { %822 = vmatpush.msra.mxu2 %v1773_v15 }
 0x4ec   :  { %823 = vmatpush.msra.mxu2 %v1779_v16 }
 0x4ee   :  { %824 = vmatpush.msra.mxu2 %v1785_v17 }
 0x562   :  { %v258_v26 = vpop.f32.mrf.mxu2 }
 0x563   :  { %v259_v27 = vadd.f32 %v1714_v11, %v258_v26 }
 0x565   :  { %v1351_v28 = vmul.f32 -1.442695, %v259_v27 }
 0x567   :  { %1416 = vpow2.f32 %v1351_v28 }
 0x56a   :  { %v550_v30 = vpop.f32.mrf.mxu2 }
 0x56b   :  { %v551_v31 = vadd.f32 %v1815_v29, %v550_v30 }
 0x56d   :  { %v1417_v32 = vpop.eup %1416  ;;  %v1359_v33 = vmul.f32 -1.442695, %v551_v31 }
 0x56e   :  { %v265_v34 = vadd.f32 1.0, %v1417_v32 }
 0x56f   :  { %1418 = vpow2.f32 %v1359_v33 }
 0x570   :  { %1420 = vrcp.f32 %v265_v34  ;;  %v277_v40 = vand.u32 2147483648, %v265_v34  ;;  %v275_v42 = vand.u32 2147483647, %v265_v34  ;;  %vm271_vm7 = vweird.f32 %v265_v34 }
 0x572   :  { %v278_v45 = vor.u32 1.1754944e-38, %v277_v40  ;;  %vm276_vm9 = vcmp.eq.f32.partialorder %v275_v42, 8.507059e+37 }
 0x575   :  { %v1419_v35 = vpop.eup %1418 }
 0x576   :  { %v1421_v36 = vpop.eup %1420  ;;  %v557_v37 = vadd.f32 1.0, %v1419_v35 }
 0x577   :  { %v267_v38 = vmul.f32 %v1421_v36, %v265_v34  ;;  %vm272_vm5 = vweird.f32 %v1421_v36 }
 0x578   :  { %1422 = vrcp.f32 %v557_v37  ;;  %vm273_vm8 = vmor %vm271_vm7, %vm272_vm5  ;;  %v569_v52 = vand.u32 2147483648, %v557_v37  ;;  %v567_v54 = vand.u32 2147483647, %v557_v37  ;;  %vm563_vm11 = vweird.f32 %v557_v37 }
 0x579   :  { %v268_v39 = vsub.f32 1.0, %v267_v38  ;;  %1424 = vtanh.f32 %v259_v27 }
 0x57a   :  { %1426 = vtanh.f32 %v551_v31  ;;  %v570_v56 = vor.u32 1.1754944e-38, %v569_v52  ;;  %vm568_vm13 = vcmp.eq.f32.partialorder %v567_v54, 8.507059e+37 }
 0x57b   :  { %v269_v41 = vmul.f32 %v1421_v36, %v268_v39 }
 0x57d   :  { %v270_v43 = vadd.f32 %v1421_v36, %v269_v41 }
 0x57e   :  { %v1423_v44 = vpop.eup %1422 }
 0x57f   :  { %v274_v46 = vsel %vm273_vm8, %v1421_v36, %v270_v43  ;;  %v559_v47 = vmul.f32 %v1423_v44, %v557_v37  ;;  %v1425_v48 = vpop.eup %1424  ;;  %vm564_vm10 = vweird.f32 %v1423_v44 }
 0x580   :  { %v279_v49 = vsel %vm276_vm9, %v278_v45, %v274_v46  ;;  %vm565_vm12 = vmor %vm563_vm11, %vm564_vm10  ;;  %v1427_v58 = vpop.eup %1426 }
 0x581   :  { %v281_v50 = vsel %vm1721_vm6, %v1425_v48, %v279_v49  ;;  %v560_v51 = vsub.f32 1.0, %v559_v47 }
 0x582   :  { %284 = vrot.lane.b32.xlu0 %v281_v50, %s1612_s2  ;;  %v282_v1 = vmul.f32 %v281_v50, %v1741_v2 }
 0x583   :  { %v561_v53 = vmul.f32 %v1423_v44, %v560_v51 }
 0x585   :  { %v562_v55 = vadd.f32 %v1423_v44, %v561_v53 }
 0x587   :  { %v566_v57 = vsel %vm565_vm12, %v1423_v44, %v562_v55 }
 0x588   :  { %v571_v59 = vsel %vm568_vm13, %v570_v56, %v566_v57  ;;  %vm370_vm13 = vcmask 1045509  }
 0x589   :  { %v573_v60 = vsel %vm1721_vm6, %v1427_v58, %v571_v59 }
 0x58a   :  { %576 = vrot.lane.b32.xlu1 %v573_v60, %s1612_s2  ;;  %v574_v18 = vmul.f32 0.0, %v573_v60 }
 0x5f4   :  { %v285_v61 = vpop.permute.xlu0 %284 }
 0x5f5   :  { %v287_v62 = vmul.f32 %v285_v61, %v281_v50 }
 0x5f7   :  { %289 = vrot.lane.b32.xlu2 %v287_v62, %s1613_s14 }
 0x5fc   :  { %v577_v63 = vpop.permute.xlu1 %576 }
 0x5fd   :  { %v579_v0 = vmul.f32 %v577_v63, %v573_v60 }
 0x5ff   :  { %581 = vrot.lane.b32.xlu0 %v579_v0, %s1613_s14 }
 0x651   :  { %v290_v3 = vpop.permute.xlu2 %289 }
 0x652   :  { %v1827_v8 = vadd.f32 %v290_v3, %v282_v1 }
 0x654   :  { %1428 = vtanh.f32 %v1827_v8 }
 0x65a   :  { %v1429_v10 = vpop.eup %1428 }
 0x65b   :  { %295 = vrot.lane.b32.xlu1 %v1429_v10, %s1612_s2 }
 0x663   :  { %591 = vrot.lane.b32.xlu1 %v1757_v9, %s1613_s14  ;;  %v300_v9 = vsel %vm299_vm14, %v1698_v6, %v1693_v4 }
 0x671   :  { %v582_v20 = vpop.permute.xlu0 %581 }
 0x672   :  { %v1833_v21 = vadd.f32 %v582_v20, %v574_v18 }
 0x674   :  { %1430 = vtanh.f32 %v1833_v21 }
 0x67a   :  { %v1431_v22 = vpop.eup %1430 }
 0x67b   :  { %587 = vrot.lane.b32.xlu2 %v1431_v22, %s1612_s2 }
 0x6cd   :  { %v296_v2 = vpop.permute.xlu1 %295 }
 0x6ce   :  { %v1837_v23 = vmul.f32 %v296_v2, %v281_v50 }
 0x6d0   :  { %v303_v24 = vrot.slane %v1837_v23, 5 }
 0x6d2   :  { %304 = vrot.lane.b32.xlu0 %v303_v24, %s1614_s15 }
 0x6d5   :  { %v588_v26 = vpop.permute.xlu2 %587  ;;  %v592_v33 = vpop.permute.xlu1 %591 }
 0x6d6   :  { %v590_v27 = vmul.f32 %v588_v26, %v573_v60 }
 0x6d8   :  { %595 = vrot.lane.b32.xlu2 %v590_v27, %s1612_s2 }
 0x732   :  { %v596_v32 = vpop.permute.xlu2 %595 }
 0x733   :  { %v598_v34 = vsel %vm515_vm3, %v592_v33, %v596_v32 }
 0x744   :  { %v305_v28 = vpop.permute.xlu0 %304 }
 0x745   :  { %v307_v30 = vsel %vm84_vm1, %v300_v9, %v305_v28 }
 0x746   :  { %v309_v31 = vrot.slane %v307_v30, 3 }
 0x748   :  { %1352 = vmatmul.msk.f32.vlgmr.msra.gmra.mxu3 %vm95_vm2, %v309_v31 }
 0x749   :  { %887 = vmatpush.msra.mxu3 %v1745_v5 }
 0x74b   :  { %888 = vmatpush.msra.mxu3 %v1747_v7 }
 0x74d   :  { %889 = vmatpush.msra.mxu3 %v1761_v12 }
 0x74f   :  { %890 = vmatpush.msra.mxu3 %v1765_v13 }
 0x750   :  { %1360 = vmatmul.msk.f32.vlgmr.msrb.gmra.mxu3 %vm529_vm4, %v598_v34 }
 0x751   :  { %891 = vmatpush.msra.mxu3 %v1771_v14 }
 0x753   :  { %892 = vmatpush.msra.mxu3 %v1773_v15 }
 0x755   :  { %893 = vmatpush.msra.mxu3 %v1779_v16 }
 0x757   :  { %894 = vmatpush.msra.mxu3 %v1785_v17 }
 0x7cb   :  { %v329_v5 = vpop.f32.mrf.mxu3 }
 0x7cc   :  { %v330_v7 = vadd.f32 %v1714_v11, %v329_v5 }
 0x7ce   :  { %v1353_v35 = vmul.f32 -1.442695, %v330_v7 }
 0x7d0   :  { %1432 = vpow2.f32 %v1353_v35 }
 0x7d3   :  { %v619_v12 = vpop.f32.mrf.mxu3 }
 0x7d4   :  { %v620_v36 = vadd.f32 %v1815_v29, %v619_v12 }
 0x7d6   :  { %v1433_v37 = vpop.eup %1432  ;;  %v1361_v13 = vmul.f32 -1.442695, %v620_v36 }
 0x7d7   :  { %v336_v38 = vadd.f32 1.0, %v1433_v37 }
 0x7d8   :  { %1434 = vpow2.f32 %v1361_v13 }
 0x7d9   :  { %1436 = vrcp.f32 %v336_v38  ;;  %v348_v17 = vand.u32 2147483648, %v336_v38  ;;  %v346_v42 = vand.u32 2147483647, %v336_v38  ;;  %vm342_vm5 = vweird.f32 %v336_v38 }
 0x7db   :  { %v349_v45 = vor.u32 1.1754944e-38, %v348_v17  ;;  %vm347_vm8 = vcmp.eq.f32.partialorder %v346_v42, 8.507059e+37 }
 0x7de   :  { %v1435_v14 = vpop.eup %1434 }
 0x7df   :  { %v1437_v39 = vpop.eup %1436  ;;  %v626_v15 = vadd.f32 1.0, %v1435_v14 }
 0x7e0   :  { %v338_v40 = vmul.f32 %v1437_v39, %v336_v38  ;;  %vm343_vm15 = vweird.f32 %v1437_v39 }
 0x7e1   :  { %1438 = vrcp.f32 %v626_v15  ;;  %vm344_vm7 = vmor %vm342_vm5, %vm343_vm15  ;;  %v638_v52 = vand.u32 2147483648, %v626_v15  ;;  %v636_v54 = vand.u32 2147483647, %v626_v15  ;;  %vm632_vm10 = vweird.f32 %v626_v15 }
 0x7e2   :  { %v339_v16 = vsub.f32 1.0, %v338_v40  ;;  %1440 = vtanh.f32 %v330_v7 }
 0x7e3   :  { %1442 = vtanh.f32 %v620_v36  ;;  %v639_v56 = vor.u32 1.1754944e-38, %v638_v52  ;;  %vm637_vm12 = vcmp.eq.f32.partialorder %v636_v54, 8.507059e+37 }
 0x7e4   :  { %v340_v41 = vmul.f32 %v1437_v39, %v339_v16 }
 0x7e6   :  { %v341_v43 = vadd.f32 %v1437_v39, %v340_v41 }
 0x7e7   :  { %v1439_v44 = vpop.eup %1438 }
 0x7e8   :  { %v345_v46 = vsel %vm344_vm7, %v1437_v39, %v341_v43  ;;  %v628_v47 = vmul.f32 %v1439_v44, %v626_v15  ;;  %v1441_v48 = vpop.eup %1440  ;;  %vm633_vm9 = vweird.f32 %v1439_v44 }
 0x7e9   :  { %v350_v49 = vsel %vm347_vm8, %v349_v45, %v345_v46  ;;  %vm634_vm11 = vmor %vm632_vm10, %vm633_vm9  ;;  %v1443_v58 = vpop.eup %1442 }
 0x7ea   :  { %v352_v50 = vsel %vm1721_vm6, %v1441_v48, %v350_v49  ;;  %v629_v51 = vsub.f32 1.0, %v628_v47 }
 0x7eb   :  { %355 = vrot.lane.b32.xlu0 %v352_v50, %s1612_s2  ;;  %v353_v1 = vmul.f32 %v352_v50, %v1827_v8 }
 0x7ec   :  { %v630_v53 = vmul.f32 %v1439_v44, %v629_v51 }
 0x7ee   :  { %v631_v55 = vadd.f32 %v1439_v44, %v630_v53 }
 0x7f0   :  { %v635_v57 = vsel %vm634_vm11, %v1439_v44, %v631_v55 }
 0x7f1   :  { %v640_v59 = vsel %vm637_vm12, %v639_v56, %v635_v57  ;;  %vm441_vm12 = vcmask 1046534  }
 0x7f2   :  { %v642_v60 = vsel %vm1721_vm6, %v1443_v58, %v640_v59 }
 0x7f3   :  { %645 = vrot.lane.b32.xlu1 %v642_v60, %s1612_s2  ;;  %v643_v20 = vmul.f32 %v642_v60, %v1833_v21  ;;  %v371_v21 = vsel %vm370_vm13, %v1698_v6, %v1693_v4 }
 0x85d   :  { %v356_v61 = vpop.permute.xlu0 %355 }
 0x85e   :  { %v358_v62 = vmul.f32 %v356_v61, %v352_v50 }
 0x860   :  { %360 = vrot.lane.b32.xlu2 %v358_v62, %s1613_s14 }
 0x865   :  { %v646_v63 = vpop.permute.xlu1 %645 }
 0x866   :  { %v648_v0 = vmul.f32 %v646_v63, %v642_v60 }
 0x868   :  { %650 = vrot.lane.b32.xlu0 %v648_v0, %s1613_s14 }
 0x8ba   :  { %v361_v3 = vpop.permute.xlu2 %360 }
 0x8bb   :  { %v1867_v10 = vadd.f32 %v361_v3, %v353_v1 }
 0x8bd   :  { %1444 = vtanh.f32 %v1867_v10 }
 0x8c3   :  { %v1445_v18 = vpop.eup %1444 }
 0x8c4   :  { %366 = vrot.lane.b32.xlu1 %v1445_v18, %s1612_s2 }
 0x8cc   :  { %660 = vrot.lane.b32.xlu1 %v1837_v23, %s1613_s14 }
 0x8da   :  { %v651_v22 = vpop.permute.xlu0 %650 }
 0x8db   :  { %v1874_v2 = vadd.f32 %v651_v22, %v643_v20 }
 0x8dd   :  { %1446 = vtanh.f32 %v1874_v2 }
 0x8e3   :  { %v1447_v24 = vpop.eup %1446 }
 0x8e4   :  { %656 = vrot.lane.b32.xlu2 %v1447_v24, %s1612_s2 }
 0x936   :  { %v367_v8 = vpop.permute.xlu1 %366 }
 0x937   :  { %v1878_v26 = vmul.f32 %v367_v8, %v352_v50 }
 0x939   :  { %v374_v27 = vrot.slane %v1878_v26, 4 }
 0x93b   :  { %375 = vrot.lane.b32.xlu0 %v374_v27, %s1614_s15 }
 0x93e   :  { %v657_v9 = vpop.permute.xlu2 %656  ;;  %v661_v33 = vpop.permute.xlu1 %660 }
 0x93f   :  { %v659_v28 = vmul.f32 %v657_v9, %v642_v60 }
 0x941   :  { %664 = vrot.lane.b32.xlu2 %v659_v28, %s1612_s2 }
 0x99b   :  { %v665_v32 = vpop.permute.xlu2 %664 }
 0x99c   :  { %v667_v34 = vsel %vm515_vm3, %v661_v33, %v665_v32 }
 0x9ad   :  { %v376_v23 = vpop.permute.xlu0 %375 }
 0x9ae   :  { %v378_v30 = vsel %vm84_vm1, %v371_v21, %v376_v23 }
 0x9af   :  { %v380_v31 = vrot.slane %v378_v30, 4 }
 0x9b1   :  { %1354 = vmatmul.msk.f32.vlgmr.msrb.gmra.mxu0 %vm95_vm2, %v380_v31 }
 0x9b9   :  { %1362 = vmatmul.msk.f32.vlgmr.msra.gmra.mxu0 %vm529_vm4, %v667_v34 }
 0xa2e   :  { %v400_v5 = vpop.f32.mrf.mxu0 }
 0xa2f   :  { %v401_v7 = vadd.f32 %v1714_v11, %v400_v5 }
 0xa31   :  { %v1355_v35 = vmul.f32 -1.442695, %v401_v7 }
 0xa33   :  { %1448 = vpow2.f32 %v1355_v35 }
 0xa36   :  { %v688_v12 = vpop.f32.mrf.mxu0 }
 0xa37   :  { %v689_v36 = vadd.f32 %v1815_v29, %v688_v12 }
 0xa39   :  { %v1449_v37 = vpop.eup %1448  ;;  %v1363_v13 = vmul.f32 -1.442695, %v689_v36 }
 0xa3a   :  { %v407_v38 = vadd.f32 1.0, %v1449_v37 }
 0xa3b   :  { %1450 = vpow2.f32 %v1363_v13 }
 0xa3c   :  { %1452 = vrcp.f32 %v407_v38  ;;  %v419_v17 = vand.u32 2147483648, %v407_v38  ;;  %v417_v42 = vand.u32 2147483647, %v407_v38  ;;  %vm413_vm15 = vweird.f32 %v407_v38 }
 0xa3e   :  { %v420_v45 = vor.u32 1.1754944e-38, %v419_v17  ;;  %vm418_vm7 = vcmp.eq.f32.partialorder %v417_v42, 8.507059e+37 }
 0xa41   :  { %v1451_v14 = vpop.eup %1450 }
 0xa42   :  { %v1453_v39 = vpop.eup %1452  ;;  %v695_v15 = vadd.f32 1.0, %v1451_v14 }
 0xa43   :  { %v409_v40 = vmul.f32 %v1453_v39, %v407_v38  ;;  %vm414_vm14 = vweird.f32 %v1453_v39 }
 0xa44   :  { %1454 = vrcp.f32 %v695_v15  ;;  %vm415_vm5 = vmor %vm413_vm15, %vm414_vm14  ;;  %v707_v52 = vand.u32 2147483648, %v695_v15  ;;  %v705_v54 = vand.u32 2147483647, %v695_v15  ;;  %vm701_vm9 = vweird.f32 %v695_v15 }
 0xa45   :  { %v410_v16 = vsub.f32 1.0, %v409_v40  ;;  %1456 = vtanh.f32 %v401_v7 }
 0xa46   :  { %1458 = vtanh.f32 %v689_v36  ;;  %v708_v56 = vor.u32 1.1754944e-38, %v707_v52  ;;  %vm706_vm11 = vcmp.eq.f32.partialorder %v705_v54, 8.507059e+37 }
 0xa47   :  { %v411_v41 = vmul.f32 %v1453_v39, %v410_v16 }
 0xa49   :  { %v412_v43 = vadd.f32 %v1453_v39, %v411_v41 }
 0xa4a   :  { %v1455_v44 = vpop.eup %1454 }
 0xa4b   :  { %v416_v46 = vsel %vm415_vm5, %v1453_v39, %v412_v43  ;;  %v697_v47 = vmul.f32 %v1455_v44, %v695_v15  ;;  %v1457_v48 = vpop.eup %1456  ;;  %vm702_vm8 = vweird.f32 %v1455_v44 }
 0xa4c   :  { %v421_v49 = vsel %vm418_vm7, %v420_v45, %v416_v46  ;;  %vm703_vm10 = vmor %vm701_vm9, %vm702_vm8  ;;  %v1459_v58 = vpop.eup %1458 }
 0xa4d   :  { %v423_v50 = vsel %vm1721_vm6, %v1457_v48, %v421_v49  ;;  %v698_v51 = vsub.f32 1.0, %v697_v47 }
 0xa4e   :  { %426 = vrot.lane.b32.xlu0 %v423_v50, %s1612_s2  ;;  %v424_v1 = vmul.f32 %v423_v50, %v1867_v10 }
 0xa4f   :  { %v699_v53 = vmul.f32 %v1455_v44, %v698_v51 }
 0xa51   :  { %v700_v55 = vadd.f32 %v1455_v44, %v699_v53 }
 0xa53   :  { %v704_v57 = vsel %vm703_vm10, %v1455_v44, %v700_v55 }
 0xa54   :  { %v709_v59 = vsel %vm706_vm11, %v708_v56, %v704_v57 }
 0xa55   :  { %v711_v60 = vsel %vm1721_vm6, %v1459_v58, %v709_v59 }
 0xa56   :  { %714 = vrot.lane.b32.xlu1 %v711_v60, %s1612_s2  ;;  %v712_v22 = vmul.f32 %v711_v60, %v1874_v2 }
 0xac0   :  { %v427_v61 = vpop.permute.xlu0 %426 }
 0xac1   :  { %v429_v62 = vmul.f32 %v427_v61, %v423_v50 }
 0xac3   :  { %431 = vrot.lane.b32.xlu2 %v429_v62, %s1613_s14 }
 0xac8   :  { %v715_v63 = vpop.permute.xlu1 %714 }
 0xac9   :  { %v717_v0 = vmul.f32 %v715_v63, %v711_v60 }
 0xacb   :  { %719 = vrot.lane.b32.xlu0 %v717_v0, %s1613_s14 }
 0xb1d   :  { %v432_v3 = vpop.permute.xlu2 %431 }
 0xb1e   :  { %v1900_v18 = vadd.f32 %v432_v3, %v424_v1 }
 0xb20   :  { %1460 = vtanh.f32 %v1900_v18 }
 0xb26   :  { %v1461_v20 = vpop.eup %1460 }
 0xb27   :  { %437 = vrot.lane.b32.xlu1 %v1461_v20, %s1612_s2 }
 0xb2f   :  { %729 = vrot.lane.b32.xlu1 %v1878_v26, %s1613_s14  ;;  %v442_v26 = vsel %vm441_vm12, %v1698_v6, %v1693_v4 }
 0xb3d   :  { %v720_v24 = vpop.permute.xlu0 %719 }
 0xb3e   :  { %v722_v8 = vadd.f32 %v720_v24, %v712_v22 }
 0xb40   :  { %1462 = vtanh.f32 %v722_v8 }
 0xb46   :  { %v1463_v27 = vpop.eup %1462 }
 0xb47   :  { %725 = vrot.lane.b32.xlu2 %v1463_v27, %s1612_s2 }
 0xb99   :  { %v438_v10 = vpop.permute.xlu1 %437 }
 0xb9a   :  { %v440_v9 = vmul.f32 %v438_v10, %v423_v50 }
 0xb9c   :  { %v445_v28 = vrot.slane %v440_v9, 3 }
 0xb9e   :  { %446 = vrot.lane.b32.xlu0 %v445_v28, %s1614_s15 }
 0xba1   :  { %v726_v21 = vpop.permute.xlu2 %725  ;;  %v730_v33 = vpop.permute.xlu1 %729 }
 0xba2   :  { %v728_v23 = vmul.f32 %v726_v21, %v711_v60 }
 0xba4   :  { %733 = vrot.lane.b32.xlu2 %v728_v23, %s1612_s2 }
 0xbfe   :  { %v734_v32 = vpop.permute.xlu2 %733 }
 0xbff   :  { %v736_v34 = vsel %vm515_vm3, %v730_v33, %v734_v32 }
 0xc10   :  { %v447_v2 = vpop.permute.xlu0 %446 }
 0xc11   :  { %v449_v30 = vsel %vm84_vm1, %v442_v26, %v447_v2 }
 0xc12   :  { %v451_v31 = vrot.slane %v449_v30, 5 }
 0xc14   :  { %1356 = vmatmul.msk.f32.vlgmr.msrb.gmra.mxu1 %vm95_vm2, %v451_v31 }
 0xc1c   :  { %1364 = vmatmul.msk.f32.vlgmr.msra.gmra.mxu1 %vm529_vm4, %v736_v34 }
 0xc91   :  { %v471_v5 = vpop.f32.mrf.mxu1 }
 0xc92   :  { %v472_v45 = vadd.f32 %v1714_v11, %v471_v5 }
 0xc94   :  { %v1357_v46 = vmul.f32 -1.442695, %v472_v45 }
 0xc99   :  { %v757_v7 = vpop.f32.mrf.mxu1 }
 0xc9a   :  { %v758_v35 = vadd.f32 %v1815_v29, %v757_v7 }
 0xc9c   :  { %v1365_v12 = vmul.f32 -1.442695, %v758_v35 }
 0xc9e   :  { %1464 = vpow2.f32 %v1365_v12 }
 0xca4   :  { %v1465_v36 = vpop.eup %1464 }
 0xca5   :  { %v764_v4 = vadd.f32 1.0, %v1465_v36 }
 0xca7   :  { %1466 = vrcp.f32 %v764_v4  ;;  %v776_v38 = vand.u32 2147483648, %v764_v4  ;;  %v774_v39 = vand.u32 2147483647, %v764_v4  ;;  %vm770_vm14 = vweird.f32 %v764_v4 }
 0xca8   :  { %1468 = vtanh.f32 %v758_v35 }
 0xca9   :  { %v777_v40 = vor.u32 1.1754944e-38, %v776_v38  ;;  %vm775_vm5 = vcmp.eq.f32.partialorder %v774_v39, 8.507059e+37  ;;  %1470 = vpow2.f32 %v1357_v46 }
 0xcad   :  { %v1467_v6 = vpop.eup %1466 }
 0xcae   :  { %v766_v37 = vmul.f32 %v1467_v6, %v764_v4  ;;  %vm771_vm13 = vweird.f32 %v1467_v6  ;;  %v1469_v17 = vpop.eup %1468 }
 0xcaf   :  { %vm772_vm15 = vmor %vm770_vm14, %vm771_vm13  ;;  %v1471_v47 = vpop.eup %1470 }
 0xcb0   :  { %v767_v13 = vsub.f32 1.0, %v766_v37  ;;  %v478_v48 = vadd.f32 1.0, %v1471_v47 }
 0xcb2   :  { %v768_v14 = vmul.f32 %v1467_v6, %v767_v13  ;;  %1472 = vrcp.f32 %v478_v48  ;;  %v490_v57 = vand.u32 2147483648, %v478_v48  ;;  %vm484_vm8 = vweird.f32 %v478_v48 }
 0xcb3   :  { %v488_v11 = vand.u32 2147483647, %v478_v48 }
 0xcb4   :  { %v769_v15 = vadd.f32 %v1467_v6, %v768_v14  ;;  %v491_v60 = vor.u32 1.1754944e-38, %v490_v57 }
 0xcb5   :  { %vm489_vm10 = vcmp.eq.f32.partialorder %v488_v11, 8.507059e+37 }
 0xcb6   :  { %v773_v16 = vsel %vm772_vm15, %v1467_v6, %v769_v15 }
 0xcb7   :  { %v778_v41 = vsel %vm775_vm5, %v777_v40, %v773_v16 }
 0xcb8   :  { %v780_v42 = vsel %vm1721_vm6, %v1469_v17, %v778_v41  ;;  %v1473_v49 = vpop.eup %1472 }
 0xcb9   :  { %783 = vrot.lane.b32.xlu0 %v780_v42, %s1612_s2  ;;  %v480_v50 = vmul.f32 %v1473_v49, %v478_v48  ;;  %v781_v51 = vmul.f32 %v780_v42, %v722_v8  ;;  %vm485_vm7 = vweird.f32 %v1473_v49 }
 0xcba   :  { %vm486_vm9 = vmor %vm484_vm8, %vm485_vm7  ;;  %vm947_vm7 = vcmask 254976   ;;  %vm955_vm8 = vcmp.eq.s32.totalorder %v1717_v19, 0 }
 0xcbb   :  { %v481_v52 = vsub.f32 1.0, %v480_v50 }
 0xcbd   :  { %v482_v55 = vmul.f32 %v1473_v49, %v481_v52 }
 0xcbf   :  { %v483_v56 = vadd.f32 %v1473_v49, %v482_v55 }
 0xcc1   :  { %798 = vrot.lane.b32.xlu0 %v440_v9, %s1613_s14  ;;  %v487_v59 = vsel %vm486_vm9, %v1473_v49, %v483_v56 }
 0xcc2   :  { %v492_v61 = vsel %vm489_vm10, %v491_v60, %v487_v59 }
 0xd2b   :  { %v784_v43 = vpop.permute.xlu0 %783 }
 0xd2c   :  { %v786_v44 = vmul.f32 %v784_v43, %v780_v42 }
 0xd2e   :  { %788 = vrot.lane.b32.xlu1 %v786_v44, %s1613_s14 }
 0xd33   :  { %v799_v22 = vpop.permute.xlu0 %798 }
 0xda0   :  { %v789_v53 = vpop.permute.xlu1 %788 }
 0xda1   :  { %v1923_v54 = vadd.f32 %v789_v53, %v781_v51 }
 0xda3   :  { %1474 = vtanh.f32 %v1923_v54 }
 0xda4   :  { %1476 = vtanh.f32 %v472_v45 }
 0xda9   :  { %v1475_v58 = vpop.eup %1474 }
 0xdaa   :  { %794 = vrot.lane.b32.xlu2 %v1475_v58, %s1612_s2  ;;  %v1477_v62 = vpop.eup %1476 }
 0xdab   :  { %v494_v63 = vsel %vm1721_vm6, %v1477_v62, %v492_v61  ;;  %v1397_v62 = vld [vmem:[%s2068_s7] ss:$0 sm:$0xff] }
 0xdac   :  { %v495_v34 = vmul.f32 %v494_v63, %v1900_v18 }
 0xdb2   :  { %497 = vrot.lane.b32.xlu2 %v494_v63, %s1612_s2 }
 0xe04   :  { %v795_v0 = vpop.permute.xlu2 %794 }
 0xe05   :  { %v797_v1 = vmul.f32 %v795_v0, %v780_v42 }
 0xe07   :  { %802 = vrot.lane.b32.xlu1 %v797_v1, %s1612_s2 }
 0xe0c   :  { %v498_v3 = vpop.permute.xlu2 %497 }
 0xe0d   :  { %v500_v20 = vmul.f32 %v498_v3, %v494_v63 }
 0xe0f   :  { %502 = vrot.lane.b32.xlu1 %v500_v20, %s1613_s14 }
 0xe79   :  { %v803_v24 = vpop.permute.xlu1 %802 }
 0xe7a   :  { %v805_v8 = vsel %vm515_vm3, %v799_v22, %v803_v24 }
 0xe7b   :  { %1366 = vmatmul.msk.f32.vlgmr.msra.gmra.mxu2 %vm529_vm4, %v805_v8 }
 0xe81   :  { %v503_v33 = vpop.permute.xlu1 %502 }
 0xe82   :  { %v505_v35 = vadd.f32 %v503_v33, %v495_v34  ;;  %v1528_v33 = vld [vmem:[%s2061_s0] sm:$0xff] }
 0xe83   :  { %v961_v34 = vrot.slane %v1528_v33, 6 }
 0xefe   :  { %v826_v27 = vpop.f32.mrf.mxu2 }
 0xeff   :  { %v827_v10 = vadd.f32 %v1815_v29, %v826_v27 }
 0xf01   :  { %v1367_v9 = vmul.f32 -1.442695, %v827_v10 }
 0xf03   :  { %1478 = vpow2.f32 %v1367_v9  ;;  %v1616_v9 = vmov 0  }
 0xf04   :  { %1392 = vset.pattern.permute.xlu1 %v1616_v9  ;;  %1393 = vset.pattern.permute.xlu2 %v1616_v9 }
 0xf05   :  { %1394 = vset.pattern.permute.xlu0 %v1616_v9 }
 0xf09   :  { %v1479_v28 = vpop.eup %1478 }
 0xf0a   :  { %v833_v21 = vadd.f32 1.0, %v1479_v28  ;;  %v975_v28 = vld [vmem:[#allocation6 + $0x20] sm:$0xff] }
 0xf0b   :  { %994 = vmatpush.msrb.mxu0 %v975_v28  ;;  %1079 = vmatpush.msrb.mxu1 %v975_v28 }
 0xf0c   :  { %1480 = vrcp.f32 %v833_v21  ;;  %v845_v30 = vand.u32 2147483648, %v833_v21  ;;  %v843_v32 = vand.u32 2147483647, %v833_v21  ;;  %vm839_vm12 = vweird.f32 %v833_v21  ;;  %1165 = vmatpush.msrb.mxu2 %v975_v28  ;;  %1249 = vmatpush.msrb.mxu3 %v975_v28 }
 0xf0d   :  { %1482 = vtanh.f32 %v827_v10 }
 0xf0e   :  { %v846_v7 = vor.u32 1.1754944e-38, %v845_v30  ;;  %vm844_vm14 = vcmp.eq.f32.partialorder %v843_v32, 8.507059e+37  ;;  %1484 = vtanh.f32 %v505_v35  ;;  %v971_v32 = vld [vmem:[#allocation6] sm:$0xff] }
 0xf12   :  { %v1481_v23 = vpop.eup %1480 }
 0xf13   :  { %v835_v26 = vmul.f32 %v1481_v23, %v833_v21  ;;  %vm840_vm11 = vweird.f32 %v1481_v23  ;;  %v1483_v36 = vpop.eup %1482  ;;  %v974_v21 = vld [vmem:[#allocation6 + $0x18] sm:$0xff] }
 0xf14   :  { %vm841_vm13 = vmor %vm839_vm12, %vm840_vm11  ;;  %v1485_v37 = vpop.eup %1484  ;;  %995 = vmatpush.msrb.mxu0 %v974_v21  ;;  %1080 = vmatpush.msrb.mxu1 %v974_v21 }
 0xf15   :  { %v836_v2 = vsub.f32 1.0, %v835_v26  ;;  %v972_v26 = vld [vmem:[#allocation6 + $0x8] sm:$0xff]  ;;  %1166 = vmatpush.msrb.mxu2 %v974_v21  ;;  %1250 = vmatpush.msrb.mxu3 %v974_v21 }
 0xf17   :  { %v837_v31 = vmul.f32 %v1481_v23, %v836_v2  ;;  %v1965_v2 = vld [vmem:[#allocation2] ss:$0 sm:$0xff] }
 0xf19   :  { %v838_v5 = vadd.f32 %v1481_v23, %v837_v31 }
 0xf1b   :  { %v842_v12 = vsel %vm841_vm13, %v1481_v23, %v838_v5  ;;  %v973_v23 = vld [vmem:[#allocation6 + $0x10] sm:$0xff] }
 0xf1c   :  { %v847_v4 = vsel %vm844_vm14, %v846_v7, %v842_v12  ;;  %996 = vmatpush.msrb.mxu0 %v973_v23  ;;  %1081 = vmatpush.msrb.mxu1 %v973_v23  ;;  %v1529_v5 = vld [vmem:[%s2061_s0 + $0x10] sm:$0xff] }
 0xf1d   :  { %v849_v6 = vsel %vm1721_vm6, %v1483_v36, %v847_v4  ;;  %1167 = vmatpush.msrb.mxu2 %v973_v23  ;;  %1251 = vmatpush.msrb.mxu3 %v973_v23  ;;  %v962_v7 = vrot.slane %v1529_v5, 5 }
 0xf1e   :  { %852 = vrot.lane.b32.xlu0 %v849_v6, %s1612_s2  ;;  %v850_v39 = vmul.f32 %v849_v6, %v1923_v54  ;;  %997 = vmatpush.msrb.mxu0 %v972_v26 }
 0xf1f   :  { %1082 = vmatpush.msrb.mxu1 %v972_v26  ;;  %1168 = vmatpush.msrb.mxu2 %v972_v26  ;;  %v963_v35 = vsel %vm81_vm0, %v962_v7, %v961_v34 }
 0xf20   :  { %1252 = vmatpush.msrb.mxu3 %v972_v26  ;;  %998 = vmatpush.msrb.mxu0 %v971_v32 }
 0xf21   :  { %1083 = vmatpush.msrb.mxu1 %v971_v32  ;;  %1169 = vmatpush.msrb.mxu2 %v971_v32 }
 0xf22   :  { %1253 = vmatpush.msrb.mxu3 %v971_v32 }
 0xf26   :  { %508 = vrot.lane.b32.xlu0 %v1485_v37, %s1612_s2  ;;  %v1986_v37 = vld [vmem:[%s2067_s6] ss:$0 sm:$0xff] }
 0xf90   :  { %v853_v13 = vpop.permute.xlu0 %852 }
 0xf91   :  { %v855_v18 = vmul.f32 %v853_v13, %v849_v6 }
 0xf93   :  { %857 = vrot.lane.b32.xlu2 %v855_v18, %s1613_s14 }
 0xf98   :  { %v509_v38 = vpop.permute.xlu0 %508 }
 0xf99   :  { %v511_v14 = vmul.f32 %v509_v38, %v494_v63 }
 0xf9b   :  { %868 = vrot.lane.b32.xlu2 %v511_v14, %s1613_s14 }
 0xfed   :  { %v858_v15 = vpop.permute.xlu2 %857 }
 0xfee   :  { %v860_v40 = vadd.f32 %v858_v15, %v850_v39 }
 0xff0   :  { %1486 = vtanh.f32 %v860_v40 }
 0xff5   :  { %v869_v42 = vpop.permute.xlu2 %868 }
 0xff6   :  { %v1487_v16 = vpop.eup %1486 }
 0xff7   :  { %863 = vrot.lane.b32.xlu1 %v1487_v16, %s1612_s2 }
0x1069   :  { %v864_v17 = vpop.permute.xlu1 %863 }
0x106a   :  { %v866_v41 = vmul.f32 %v864_v17, %v849_v6 }
0x106c   :  { %872 = vrot.lane.b32.xlu0 %v866_v41, %s1612_s2 }
0x10de   :  { %v873_v43 = vpop.permute.xlu0 %872 }
0x10df   :  { %v875_v44 = vsel %vm515_vm3, %v869_v42, %v873_v43 }
0x10e0   :  { %1368 = vmatmul.msk.f32.vlgmr.msra.gmra.mxu3 %vm529_vm4, %v875_v44 }
0x1163   :  { %v896_v45 = vpop.f32.mrf.mxu3 }
0x1164   :  { %v897_v46 = vadd.f32 %v1815_v29, %v896_v45 }
0x1166   :  { %v1369_v47 = vmul.f32 -1.442695, %v897_v46 }
0x1168   :  { %1488 = vpow2.f32 %v1369_v47 }
0x116e   :  { %v1489_v48 = vpop.eup %1488 }
0x116f   :  { %v903_v49 = vadd.f32 1.0, %v1489_v48 }
0x1171   :  { %1490 = vrcp.f32 %v903_v49  ;;  %v915_v53 = vand.u32 2147483648, %v903_v49  ;;  %v913_v55 = vand.u32 2147483647, %v903_v49  ;;  %vm909_vm3 = vweird.f32 %v903_v49 }
0x1172   :  { %1492 = vtanh.f32 %v897_v46 }
0x1173   :  { %v916_v57 = vor.u32 1.1754944e-38, %v915_v53  ;;  %vm914_vm4 = vcmp.eq.f32.partialorder %v913_v55, 8.507059e+37 }
0x1177   :  { %v1491_v50 = vpop.eup %1490 }
0x1178   :  { %v905_v51 = vmul.f32 %v1491_v50, %v903_v49  ;;  %vm910_vm15 = vweird.f32 %v1491_v50  ;;  %v1493_v29 = vpop.eup %1492 }
0x1179   :  { %vm911_vm5 = vmor %vm909_vm3, %vm910_vm15 }
0x117a   :  { %v906_v52 = vsub.f32 1.0, %v905_v51 }
0x117c   :  { %v907_v54 = vmul.f32 %v1491_v50, %v906_v52 }
0x117e   :  { %v908_v56 = vadd.f32 %v1491_v50, %v907_v54 }
0x1180   :  { %v912_v58 = vsel %vm911_vm5, %v1491_v50, %v908_v56 }
0x1181   :  { %v917_v11 = vsel %vm914_vm4, %v916_v57, %v912_v58 }
0x1182   :  { %v919_v59 = vsel %vm1721_vm6, %v1493_v29, %v917_v11 }
0x1183   :  { %922 = vrot.lane.b32.xlu1 %v919_v59, %s1612_s2  ;;  %v920_v63 = vmul.f32 %v919_v59, %v860_v40 }
0x118b   :  { %939 = vrot.lane.b32.xlu1 %v1397_v62, %s1615_s19  ;;  %v1056_v62 = vrot.slane %v1529_v5, 6 }
0x11f5   :  { %v923_v60 = vpop.permute.xlu1 %922 }
0x11f6   :  { %v925_v61 = vmul.f32 %v923_v60, %v919_v59 }
0x11f8   :  { %927 = vrot.lane.b32.xlu2 %v925_v61, %s1613_s14  ;;  %v1055_v61 = vrot.slane %v1528_v33, 7 }
0x11fd   :  { %v1959_v22 = vpop.permute.xlu1 %939 }
0x1252   :  { %v928_v0 = vpop.permute.xlu2 %927 }
0x1253   :  { %v1955_v1 = vadd.f32 %v928_v0, %v920_v63  ;;  %v1057_v63 = vsel %vm81_vm0, %v1056_v62, %v1055_v61 }
0x1255   :  { %1494 = vtanh.f32 %v1955_v1 }
0x125b   :  { %v1495_v3 = vpop.eup %1494 }
0x125c   :  { %933 = vrot.lane.b32.xlu0 %v1495_v3, %s1612_s2 }
0x12ce   :  { %v934_v20 = vpop.permute.xlu0 %933 }
0x12cf   :  { %v936_v24 = vmul.f32 %v934_v20, %v919_v59 }
0x12d1   :  { %v942_v8 = vmul.f32 %v1959_v22, %v936_v24 }
0x12d3   :  { %944 = vrot.lane.b32.xlu2 %v942_v8, %s1613_s14 }
0x12db   :  { %967 = vrot.lane.b32.xlu2 %v936_v24, %s1614_s15 }
0x132d   :  { %v945_v27 = vpop.permute.xlu2 %944 }
0x132e   :  { %v948_v10 = vsel %vm947_vm7, %v945_v27, 0.0 }
0x132f   :  { %949 = vadd.xlane.f32.xlu0 %v948_v10 }
0x1335   :  { %v968_v36 = vpop.permute.xlu2 %967 }
0x13a2   :  { %v950_v30 = vpop.xlane.xlu0 %949 }
0x13a3   :  { %v1968_v31 = vadd.f32 %v1965_v2, %v950_v30 }
0x13a5   :  { %958 = vperm.xlu1 %1392, %v1968_v31  }
0x1417   :  { %v959_v12 = vpop.permute.xlu1 %958 }
0x1418   :  { %v965_v4 = vsel %vm955_vm8, %v959_v12, %v963_v35 }
0x1419   :  { %v970_v6 = vsel %vm84_vm1, %v965_v4, %v968_v36 }
0x141a   :  { %1370 = vmatmul.msk.f32.vlgmr.msrb.gmra.mxu0 %vm95_vm2, %v970_v6 }
0x1497   :  { %v1000_v13 = vpop.f32.mrf.mxu0 }
0x1498   :  { %v1001_v18 = vadd.f32 %v1986_v37, %v1000_v13 }
0x149a   :  { %v1371_v38 = vmul.f32 -1.442695, %v1001_v18 }
0x149c   :  { %1496 = vpow2.f32 %v1371_v38 }
0x14a2   :  { %v1497_v14 = vpop.eup %1496 }
0x14a3   :  { %v1007_v39 = vadd.f32 1.0, %v1497_v14 }
0x14a5   :  { %1498 = vrcp.f32 %v1007_v39  ;;  %v1019_v17 = vand.u32 2147483648, %v1007_v39  ;;  %v1017_v42 = vand.u32 2147483647, %v1007_v39  ;;  %vm1013_vm10 = vweird.f32 %v1007_v39 }
0x14a6   :  { %1500 = vtanh.f32 %v1001_v18 }
0x14a7   :  { %v1020_v44 = vor.u32 1.1754944e-38, %v1019_v17  ;;  %vm1018_vm12 = vcmp.eq.f32.partialorder %v1017_v42, 8.507059e+37 }
0x14ab   :  { %v1499_v15 = vpop.eup %1498 }
0x14ac   :  { %v1009_v40 = vmul.f32 %v1499_v15, %v1007_v39  ;;  %vm1014_vm9 = vweird.f32 %v1499_v15  ;;  %v1501_v46 = vpop.eup %1500 }
0x14ad   :  { %vm1015_vm11 = vmor %vm1013_vm10, %vm1014_vm9 }
0x14ae   :  { %v1010_v16 = vsub.f32 1.0, %v1009_v40 }
0x14b0   :  { %v1011_v41 = vmul.f32 %v1499_v15, %v1010_v16 }
0x14b2   :  { %v1012_v43 = vadd.f32 %v1499_v15, %v1011_v41  ;;  %v70_v41 = vld [vmem:[%s2061_s0 + $0x18] sm:$0x3] }
0x14b3   :  { %v1142_v42 = vrot.slane %v70_v41, 7 }
0x14b4   :  { %v1016_v45 = vsel %vm1015_vm11, %v1499_v15, %v1012_v43  ;;  %v68_v43 = vld [vmem:[%s2061_s0 + $0x8] sm:$0x3]  ;;  %s1617_s0 = smov 2   ;;  %vm1320_vm11 = vcmask 15360  }
0x14b5   :  { %v1021_v47 = vsel %vm1018_vm12, %v1020_v44, %v1016_v45  ;;  %v1143_v44 = vsel %vm81_vm0, %v1142_v42, %v68_v43  ;;  %vm1322_vm12 = vcmask 23552  }
0x14b6   :  { %v1023_v48 = vsel %vm1721_vm6, %v1501_v46, %v1021_v47 }
0x14b7   :  { %1026 = vrot.lane.b32.xlu1 %v1023_v48, %s1612_s2  ;;  %v1024_v51 = vmul.f32 %v1023_v48, %v1955_v1 }
0x1529   :  { %v1027_v49 = vpop.permute.xlu1 %1026 }
0x152a   :  { %v1029_v50 = vmul.f32 %v1027_v49, %v1023_v48 }
0x152c   :  { %1031 = vrot.lane.b32.xlu2 %v1029_v50, %s1613_s14 }
0x1586   :  { %v1032_v52 = vpop.permute.xlu2 %1031 }
0x1587   :  { %v1034_v53 = vadd.f32 %v1032_v52, %v1024_v51 }
0x1589   :  { %1502 = vtanh.f32 %v1034_v53 }
0x158f   :  { %v1503_v54 = vpop.eup %1502 }
0x1590   :  { %1037 = vrot.lane.b32.xlu1 %v1503_v54, %s1612_s2 }
0x1602   :  { %v1038_v55 = vpop.permute.xlu1 %1037 }
0x1603   :  { %v1040_v56 = vmul.f32 %v1038_v55, %v1023_v48 }
0x1605   :  { %v1041_v57 = vmul.f32 %v1040_v56, %v1959_v22 }
0x1607   :  { %1043 = vrot.lane.b32.xlu2 %v1041_v57, %s1613_s14 }
0x1661   :  { %v1044_v58 = vpop.permute.xlu2 %1043 }
0x1662   :  { %v1046_v29 = vsel %vm947_vm7, %v1044_v58, 0.0 }
0x1663   :  { %1047 = vadd.xlane.f32.xlu1 %v1046_v29 }
0x16d6   :  { %v1048_v11 = vpop.xlane.xlu1 %1047 }
0x16d7   :  { %v1999_v59 = vadd.f32 %v1965_v2, %v1048_v11 }
0x16d9   :  { %1052 = vperm.xlu2 %1393, %v1999_v59  }
0x16e1   :  { %1061 = vrot.lane.b32.xlu2 %v1040_v56, %s1614_s15 }
0x1733   :  { %v1053_v60 = vpop.permute.xlu2 %1052 }
0x1734   :  { %v1059_v0 = vsel %vm955_vm8, %v1053_v60, %v1057_v63 }
0x173b   :  { %v1062_v1 = vpop.permute.xlu2 %1061 }
0x173c   :  { %v1064_v3 = vsel %vm84_vm1, %v1059_v0, %v1062_v1 }
0x173d   :  { %1372 = vmatmul.msk.f32.vlgmr.msrb.gmra.mxu1 %vm95_vm2, %v1064_v3 }
0x17ba   :  { %v1085_v20 = vpop.f32.mrf.mxu1 }
0x17bb   :  { %v1086_v24 = vadd.f32 %v1986_v37, %v1085_v20 }
0x17bd   :  { %v1373_v8 = vmul.f32 -1.442695, %v1086_v24 }
0x17bf   :  { %1504 = vpow2.f32 %v1373_v8 }
0x17c5   :  { %v1505_v27 = vpop.eup %1504 }
0x17c6   :  { %v1092_v10 = vadd.f32 1.0, %v1505_v27 }
0x17c8   :  { %1506 = vrcp.f32 %v1092_v10  ;;  %v1104_v23 = vand.u32 2147483648, %v1092_v10  ;;  %v1102_v30 = vand.u32 2147483647, %v1092_v10  ;;  %vm1098_vm14 = vweird.f32 %v1092_v10 }
0x17c9   :  { %1508 = vtanh.f32 %v1086_v24 }
0x17ca   :  { %v1105_v33 = vor.u32 1.1754944e-38, %v1104_v23  ;;  %vm1103_vm3 = vcmp.eq.f32.partialorder %v1102_v30, 8.507059e+37 }
0x17ce   :  { %v1507_v9 = vpop.eup %1506 }
0x17cf   :  { %v1094_v28 = vmul.f32 %v1507_v9, %v1092_v10  ;;  %vm1099_vm13 = vweird.f32 %v1507_v9  ;;  %v1509_v5 = vpop.eup %1508 }
0x17d0   :  { %vm1100_vm15 = vmor %vm1098_vm14, %vm1099_vm13  ;;  %vm1326_vm13 = vcmask 33792  }
0x17d1   :  { %v1095_v21 = vsub.f32 1.0, %v1094_v28 }
0x17d3   :  { %v1096_v26 = vmul.f32 %v1507_v9, %v1095_v21 }
0x17d5   :  { %v1097_v32 = vadd.f32 %v1507_v9, %v1096_v26 }
0x17d7   :  { %v1101_v34 = vsel %vm1100_vm15, %v1507_v9, %v1097_v32  ;;  %v1226_v32 = vrot.slane %v68_v43, 1 }
0x17d8   :  { %v1106_v7 = vsel %vm1103_vm3, %v1105_v33, %v1101_v34 }
0x17d9   :  { %v1108_v35 = vsel %vm1721_vm6, %v1509_v5, %v1106_v7  ;;  %v1227_v33 = vsel %vm81_vm0, %v70_v41, %v1226_v32 }
0x17da   :  { %1111 = vrot.lane.b32.xlu2 %v1108_v35, %s1612_s2  ;;  %v1109_v4 = vmul.f32 %v1108_v35, %v1034_v53 }
0x1834   :  { %v1112_v12 = vpop.permute.xlu2 %1111 }
0x1835   :  { %v1114_v36 = vmul.f32 %v1112_v12, %v1108_v35 }
0x1837   :  { %1116 = vrot.lane.b32.xlu0 %v1114_v36, %s1613_s14 }
0x18a9   :  { %v1117_v6 = vpop.permute.xlu0 %1116 }
0x18aa   :  { %v1119_v13 = vadd.f32 %v1117_v6, %v1109_v4 }
0x18ac   :  { %1510 = vtanh.f32 %v1119_v13 }
0x18b2   :  { %v1511_v18 = vpop.eup %1510 }
0x18b3   :  { %1122 = vrot.lane.b32.xlu2 %v1511_v18, %s1612_s2 }
0x190d   :  { %v1123_v38 = vpop.permute.xlu2 %1122 }
0x190e   :  { %v1125_v14 = vmul.f32 %v1123_v38, %v1108_v35 }
0x1910   :  { %v1126_v39 = vmul.f32 %v1125_v14, %v1959_v22  ;;  %1147 = vrot.lane.b32.xlu1 %v1125_v14, %s1614_s15 }
0x1912   :  { %1128 = vrot.lane.b32.xlu2 %v1126_v39, %s1613_s14 }
0x196c   :  { %v1129_v15 = vpop.permute.xlu2 %1128 }
0x196d   :  { %v1131_v40 = vsel %vm947_vm7, %v1129_v15, 0.0 }
0x196e   :  { %1132 = vadd.xlane.f32.xlu0 %v1131_v40 }
0x1982   :  { %v1148_v46 = vpop.permute.xlu1 %1147 }
0x19e1   :  { %v1133_v16 = vpop.xlane.xlu0 %1132 }
0x19e2   :  { %v1134_v17 = vadd.f32 %v1965_v2, %v1133_v16 }
0x19e4   :  { %1137 = vperm.xlu2 %1393, %v1134_v17  }
0x1a3e   :  { %v1138_v45 = vpop.permute.xlu2 %1137 }
0x1a3f   :  { %v1145_v47 = vsel %vm955_vm8, %v1138_v45, %v1143_v44 }
0x1a40   :  { %v1150_v48 = vsel %vm84_vm1, %v1145_v47, %v1148_v46 }
0x1a41   :  { %1374 = vmatmul.msk.f32.vlgmr.msrb.gmra.mxu2 %vm95_vm2, %v1150_v48 }
0x1ac4   :  { %v1171_v49 = vpop.f32.mrf.mxu2 }
0x1ac5   :  { %v1172_v50 = vadd.f32 %v1986_v37, %v1171_v49 }
0x1ac7   :  { %v1375_v51 = vmul.f32 -1.442695, %v1172_v50 }
0x1ac9   :  { %1512 = vpow2.f32 %v1375_v51 }
0x1acf   :  { %v1513_v52 = vpop.eup %1512 }
0x1ad0   :  { %v1178_v53 = vadd.f32 1.0, %v1513_v52 }
0x1ad2   :  { %1514 = vrcp.f32 %v1178_v53  ;;  %v1190_v57 = vand.u32 2147483648, %v1178_v53  ;;  %v1188_v29 = vand.u32 2147483647, %v1178_v53  ;;  %vm1184_vm4 = vweird.f32 %v1178_v53 }
0x1ad3   :  { %1516 = vtanh.f32 %v1172_v50 }
0x1ad4   :  { %v1191_v60 = vor.u32 1.1754944e-38, %v1190_v57  ;;  %vm1189_vm10 = vcmp.eq.f32.partialorder %v1188_v29, 8.507059e+37 }
0x1ad8   :  { %v1515_v54 = vpop.eup %1514 }
0x1ad9   :  { %v1180_v55 = vmul.f32 %v1515_v54, %v1178_v53  ;;  %vm1185_vm5 = vweird.f32 %v1515_v54  ;;  %v1517_v62 = vpop.eup %1516 }
0x1ada   :  { %vm1186_vm9 = vmor %vm1184_vm4, %vm1185_vm5 }
0x1adb   :  { %v1181_v56 = vsub.f32 1.0, %v1180_v55 }
0x1add   :  { %v1182_v58 = vmul.f32 %v1515_v54, %v1181_v56 }
0x1adf   :  { %v1183_v11 = vadd.f32 %v1515_v54, %v1182_v58 }
0x1ae1   :  { %v1187_v61 = vsel %vm1186_vm9, %v1515_v54, %v1183_v11 }
0x1ae2   :  { %v1192_v63 = vsel %vm1189_vm10, %v1191_v60, %v1187_v61 }
0x1ae3   :  { %v1194_v0 = vsel %vm1721_vm6, %v1517_v62, %v1192_v63 }
0x1ae4   :  { %1197 = vrot.lane.b32.xlu2 %v1194_v0, %s1612_s2  ;;  %v1195_v20 = vmul.f32 %v1194_v0, %v1119_v13 }
0x1b3e   :  { %v1198_v1 = vpop.permute.xlu2 %1197 }
0x1b3f   :  { %v1200_v3 = vmul.f32 %v1198_v1, %v1194_v0 }
0x1b41   :  { %1202 = vrot.lane.b32.xlu2 %v1200_v3, %s1613_s14 }
0x1b9b   :  { %v1203_v24 = vpop.permute.xlu2 %1202 }
0x1b9c   :  { %v1205_v8 = vadd.f32 %v1203_v24, %v1195_v20 }
0x1b9e   :  { %1518 = vtanh.f32 %v1205_v8 }
0x1ba4   :  { %v1519_v27 = vpop.eup %1518 }
0x1ba5   :  { %1208 = vrot.lane.b32.xlu2 %v1519_v27, %s1612_s2 }
0x1bff   :  { %v1209_v10 = vpop.permute.xlu2 %1208 }
0x1c00   :  { %v1211_v9 = vmul.f32 %v1209_v10, %v1194_v0 }
0x1c02   :  { %v1212_v28 = vmul.f32 %v1211_v9, %v1959_v22  ;;  %1231 = vrot.lane.b32.xlu0 %v1211_v9, %s1614_s15 }
0x1c04   :  { %1214 = vrot.lane.b32.xlu1 %v1212_v28, %s1613_s14 }
0x1c74   :  { %v1232_v5 = vpop.permute.xlu0 %1231 }
0x1c76   :  { %v1215_v21 = vpop.permute.xlu1 %1214 }
0x1c77   :  { %v1217_v23 = vsel %vm947_vm7, %v1215_v21, 0.0 }
0x1c78   :  { %1218 = vadd.xlane.f32.xlu2 %v1217_v23 }
0x1c90   :  { %1308 = vrot.lane.b32.xlu2 %v1134_v17, %s1617_s0 }
0x1ceb   :  { %v1219_v26 = vpop.xlane.xlu2 %1218 }
0x1cec   :  { %v1220_v30 = vadd.f32 %v1965_v2, %v1219_v26 }
0x1cee   :  { %1223 = vperm.xlu1 %1392, %v1220_v30  }
0x1d60   :  { %v1224_v34 = vpop.permute.xlu1 %1223 }
0x1d61   :  { %v1229_v7 = vsel %vm955_vm8, %v1224_v34, %v1227_v33 }
0x1d62   :  { %v1234_v35 = vsel %vm84_vm1, %v1229_v7, %v1232_v5 }
0x1d63   :  { %1376 = vmatmul.msk.f32.vlgmr.msrb.gmra.mxu3 %vm95_vm2, %v1234_v35 }
0x1de6   :  { %v1255_v12 = vpop.f32.mrf.mxu3 }
0x1de7   :  { %v1256_v36 = vadd.f32 %v1986_v37, %v1255_v12 }
0x1de9   :  { %v1377_v4 = vmul.f32 -1.442695, %v1256_v36 }
0x1deb   :  { %1520 = vpow2.f32 %v1377_v4 }
0x1df1   :  { %v1521_v6 = vpop.eup %1520 }
0x1df2   :  { %v1262_v13 = vadd.f32 1.0, %v1521_v6 }
0x1df4   :  { %1522 = vrcp.f32 %v1262_v13  ;;  %v1274_v39 = vand.u32 2147483648, %v1262_v13  ;;  %v1272_v19 = vand.u32 2147483647, %v1262_v13  ;;  %vm1268_vm1 = vweird.f32 %v1262_v13 }
0x1df5   :  { %1524 = vtanh.f32 %v1256_v36 }
0x1df6   :  { %v1275_v16 = vor.u32 1.1754944e-38, %v1274_v39  ;;  %vm1273_vm2 = vcmp.eq.f32.partialorder %v1272_v19, 8.507059e+37 }
0x1dfa   :  { %v1523_v18 = vpop.eup %1522 }
0x1dfb   :  { %v1264_v38 = vmul.f32 %v1523_v18, %v1262_v13  ;;  %vm1269_vm0 = vweird.f32 %v1523_v18  ;;  %v1525_v37 = vpop.eup %1524 }
0x1dfc   :  { %vm1270_vm8 = vmor %vm1268_vm1, %vm1269_vm0 }
0x1dfd   :  { %v1265_v14 = vsub.f32 1.0, %v1264_v38 }
0x1dff   :  { %v1266_v15 = vmul.f32 %v1523_v18, %v1265_v14 }
0x1e01   :  { %v1267_v40 = vadd.f32 %v1523_v18, %v1266_v15 }
0x1e03   :  { %v1271_v17 = vsel %vm1270_vm8, %v1523_v18, %v1267_v40 }
0x1e04   :  { %v1276_v41 = vsel %vm1273_vm2, %v1275_v16, %v1271_v17 }
0x1e05   :  { %v1278_v42 = vsel %vm1721_vm6, %v1525_v37, %v1276_v41  ;;  %vm1318_vm6 = vcmask 7168  }
0x1e06   :  { %1281 = vrot.lane.b32.xlu1 %v1278_v42, %s1612_s2  ;;  %v1279_v45 = vmul.f32 %v1278_v42, %v1205_v8 }
0x1e78   :  { %v1282_v43 = vpop.permute.xlu1 %1281 }
0x1e79   :  { %v1284_v44 = vmul.f32 %v1282_v43, %v1278_v42 }
0x1e7b   :  { %1286 = vrot.lane.b32.xlu1 %v1284_v44, %s1613_s14 }
0x1eed   :  { %v1287_v46 = vpop.permute.xlu1 %1286 }
0x1eee   :  { %v1289_v47 = vadd.f32 %v1287_v46, %v1279_v45 }
0x1ef0   :  { %1526 = vtanh.f32 %v1289_v47 }
0x1ef6   :  { %v1527_v48 = vpop.eup %1526 }
0x1ef7   :  { %1292 = vrot.lane.b32.xlu1 %v1527_v48, %s1612_s2 }
0x1f69   :  { %v1293_v49 = vpop.permute.xlu1 %1292 }
0x1f6a   :  { %v1295_v50 = vmul.f32 %v1293_v49, %v1278_v42 }
0x1f6c   :  { %v1296_v51 = vmul.f32 %v1295_v50, %v1959_v22 }
0x1f6e   :  { %1298 = vrot.lane.b32.xlu0 %v1296_v51, %s1613_s14 }
0x1f76   :  { %1305 = vrot.lane.b32.xlu0 %v1999_v59, %s1618_s25  ;;  %v1309_v59 = vpop.permute.xlu2 %1308 }
0x1f7e   :  { %1311 = vrot.lane.b32.xlu0 %v1220_v30, %s1619_s26 }
0x1fe0   :  { %v1299_v25 = vpop.permute.xlu0 %1298 }
0x1fe1   :  { %v1301_v52 = vsel %vm947_vm7, %v1299_v25, 0.0  ;;  %vm1324_vm7 = vcmask 31744  }
0x1fe2   :  { %1302 = vadd.xlane.f32.xlu1 %v1301_v52 }
0x1fe8   :  { %v1306_v55 = vpop.permute.xlu0 %1305 }
0x1fe9   :  { %v1319_v22 = vsel %vm1318_vm6, %v1968_v31, %v1306_v55 }
0x1fea   :  { %v1321_v57 = vsel %vm1320_vm11, %v1319_v22, %v1309_v59 }
0x1ff0   :  { %v1312_v56 = vpop.permute.xlu0 %1311 }
0x2055   :  { %v1303_v53 = vpop.xlane.xlu1 %1302 }
0x2056   :  { %v1304_v54 = vadd.f32 %v1965_v2, %v1303_v53  ;;  %v1323_v2 = vsel %vm1322_vm12, %v1321_v57, %v1312_v56 }
0x2058   :  { %1315 = vrot.lane.b32.xlu0 %v1304_v54, %s1620_s27 }
0x20ca   :  { %v1316_v58 = vpop.permute.xlu0 %1315 }
0x20cb   :  { %v1325_v29 = vsel %vm1324_vm7, %v1323_v2, %v1316_v58 }
0x20cc   :  { %1327 = vst.msk [vmem:[#allocation8] sm:$0x3] %vm1326_vm13, %v1325_v29 }
0x20cd   :  { %1338 = dma.vmem_to_hbm [thread:$0]  %s1334_s29, 32, %s1336_s11, [#allocation5]  }
0x20ce   :  { %1606 = dma.done.wait [#allocation5], 32  }
0x20cf   :  { %1607 = vsyncadd [#allocation5], 4294967264 }
0x20d0   :  { %1343 = vsyncpa [#allocation4], 1 }
0x20d1   :  { %1344 = vsyncpa [#allocation7], 1 }
0x20d2   :  { %1345 = vsyncpa [#allocation5], 1 }

</bundles_post_ra>
